<compile_context>
chip_gen: v5e
topology: v5e:2x2
jax: 0.10.0
libtpu: 0.0.40
codegen_flags: <defaults>
</compile_context>

<pallas_src>
import functools
import numpy as np
import jax
import jax.numpy as jnp
from jax.experimental import pallas as pl
from jax.experimental.pallas import tpu as pltpu


def _pe2d_kernel(pos_x_ref, a_ref, b_ref, out_ref):
    # pos_x_ref: (TX, 1)    f32  positions along x for this tile
    # a_ref    : (1, Y*C)   f32  per-column coefficient of pos_x
    # b_ref    : (1, Y*C)   f32  per-column offset (encodes y-part + phase)
    # out_ref  : (TX, Y*C)  output dtype
    #
    # out[x, y*C + c] = sin(pos_x[x] * a[y*C+c] + b[y*C+c])
    #   c <  channels : a = inv_freq[c//2], b = phase[c]          -> x embedding
    #   c >= channels : a = 0,              b = pos_y*inv_freq+ph -> y embedding
    out_ref[...] = jnp.sin(pos_x_ref[...] * a_ref[...] + b_ref[...]).astype(out_ref.dtype)


def _build_coeffs(X, Y, orig_ch, changeX):
    """Host-side (shape-only) parameter setup, identical math to the module."""
    channels = int(np.ceil(orig_ch / 4) * 2)
    inv_freq = 1.0 / 10000 ** (np.arange(0, channels, 2, dtype=np.float32) / channels)
    inv_freq = inv_freq.astype(np.float32)
    inv_freq_rep = np.repeat(inv_freq, 2)                                  # (channels,)
    # sin(t + 0) = sin(t), sin(t + pi/2) = cos(t)  ->  interleaved sin/cos
    phase = np.tile(np.array([0.0, np.pi / 2], dtype=np.float32), channels // 2)

    pos_x = np.arange(X, dtype=np.float32)
    pos_y = np.arange(Y, dtype=np.float32)
    if changeX is True:
        pos_x = np.arange(0, 4, 1.6, dtype=np.float32)   # len 3; requires X == 3
        assert pos_x.shape[0] == X, "changeX=True requires x-dim == 3 (torch broadcast)"
    elif changeX is False:
        pos_y = np.arange(0, 5, 0.6, dtype=np.float32)   # len 9; requires Y == 9
        assert pos_y.shape[0] == Y, "changeX=False requires y-dim == 9 (torch broadcast)"

    # Flattened column index j = y*orig_ch + c, j in [0, Y*orig_ch)
    c_idx = np.tile(np.arange(orig_ch), Y)               # channel within position
    y_idx = np.repeat(np.arange(Y), orig_ch)             # y position
    is_x = c_idx < channels                              # x-embedding channels
    cx = np.where(is_x, c_idx, 0)                        # safe gather index
    cy = np.where(is_x, 0, c_idx - channels)             # safe gather index

    a_col = np.where(is_x, inv_freq_rep[cx], np.float32(0.0)).astype(np.float32)
    b_col = np.where(is_x, phase[cx],
                     pos_y[y_idx] * inv_freq_rep[cy] + phase[cy]).astype(np.float32)
    return pos_x, a_col, b_col


def positional_encoding_2d_updated(tensor, changeX=None):
    """JAX/Pallas equivalent of PositionalEncoding2DUpdated.forward."""
    # TODO(synk): the stateful `cached_penc` buffer (caching across calls on the
    # torch module) is intentionally not reproduced; each call recomputes.
    if tensor.ndim != 4:
        raise RuntimeError("The input tensor has to be 4d!")
    B, X, Y, orig_ch = tensor.shape
    Ycol = Y * orig_ch

    pos_x_np, a_np, b_np = _build_coeffs(X, Y, orig_ch, changeX)
    pos_x = jnp.asarray(pos_x_np).reshape(X, 1)
    a_col = jnp.asarray(a_np).reshape(1, Ycol)
    b_col = jnp.asarray(b_np).reshape(1, Ycol)

    # Tile over X only (lane dim Y*C is kept whole and dense). Keep each f32
    # block around a few MiB so it is safe even under v7x's smaller VMEM.
    max_rows = max(8, (4 << 20) // (Ycol * 4))
    tx = X if X <= max_rows else (max_rows // 8) * 8
    grid = (pl.cdiv(X, tx),)

    out_dsize = np.dtype(tensor.dtype).itemsize
    cost = pl.CostEstimate(
        flops=2 * X * Ycol,
        transcendentals=X * Ycol,
        bytes_accessed=X * Ycol * out_dsize + (X + 2 * Ycol) * 4,
    )

    pe_flat = pl.pallas_call(
        _pe2d_kernel,
        out_shape=jax.ShapeDtypeStruct((X, Ycol), tensor.dtype),
        grid=grid,
        in_specs=[
            pl.BlockSpec((tx, 1), lambda i: (i, 0)),
            pl.BlockSpec((1, Ycol), lambda i: (0, 0)),
            pl.BlockSpec((1, Ycol), lambda i: (0, 0)),
        ],
        out_specs=pl.BlockSpec((tx, Ycol), lambda i: (i, 0)),
        compiler_params=pltpu.CompilerParams(
            dimension_semantics=("parallel",)),
        cost_estimate=cost,
    )(pos_x, a_col, b_col)

    pe = pe_flat.reshape(X, Y, orig_ch)
    # Batch-invariant: broadcast instead of writing B copies from the kernel.
    return jnp.broadcast_to(pe[None], (B, X, Y, orig_ch))


def _reference(tensor_shape, changeX=None):
    """Pure-numpy reproduction of the PyTorch forward, for verification."""
    B, X, Y, orig_ch = tensor_shape
    channels = int(np.ceil(orig_ch / 4) * 2)
    inv_freq = 1.0 / 10000 ** (np.arange(0, channels, 2, dtype=np.float32) / channels)
    inv_freq = inv_freq.astype(np.float32)
    pos_x = np.arange(X, dtype=np.float32)
    pos_y = np.arange(Y, dtype=np.float32)
    if changeX is True:
        pos_x = np.arange(0, 4, 1.6, dtype=np.float32)
    elif changeX is False:
        pos_y = np.arange(0, 5, 0.6, dtype=np.float32)

    def get_emb(s):
        e = np.stack([np.sin(s), np.cos(s)], axis=-1)
        return e.reshape(s.shape[0], -1)

    sin_x = np.einsum("i,j->ij", pos_x, inv_freq)
    sin_y = np.einsum("i,j->ij", pos_y, inv_freq)
    emb_x = get_emb(sin_x)[:, None, :]
    emb_y = get_emb(sin_y)
    emb = np.zeros((X, Y, channels * 2), dtype=np.float32)
    emb[:, :, :channels] = emb_x
    emb[:, :, channels:2 * channels] = emb_y
    return np.broadcast_to(emb[None, :, :, :orig_ch], (B, X, Y, orig_ch)).copy()


if __name__ == "__main__":
    key = jax.random.PRNGKey(0)

    # Main test: matches the module's (batch, x, y, ch) convention.
    B, X, Y, C = 2, 16, 16, 32
    x = jax.random.normal(key, (B, X, Y, C), dtype=jnp.float32)
    out = positional_encoding_2d_updated(x, changeX=None)
    out = jax.block_until_ready(out)
    ref = _reference((B, X, Y, C), changeX=None)
    np.testing.assert_allclose(np.asarray(out), ref, rtol=1e-5, atol=1e-5)
    assert out.shape == (B, X, Y, C) and out.dtype == x.dtype

    # Secondary check: channel count not a multiple of 4 (exercises the
    # 2*channels > orig_ch slicing path).
    B2, X2, Y2, C2 = 1, 8, 8, 10
    x2 = jax.random.normal(key, (B2, X2, Y2, C2), dtype=jnp.float32)
    out2 = jax.block_until_ready(positional_encoding_2d_updated(x2, changeX=None))
    ref2 = _reference((B2, X2, Y2, C2), changeX=None)
    np.testing.assert_allclose(np.asarray(out2), ref2, rtol=1e-5, atol=1e-5)

    print("KERNEL_OK")
</pallas_src>

<mosaic_0001>
module attributes {stable_mosaic.version = 11 : i64} {
  func.func @_pe2d_kernel(%arg0: i32, %arg1: memref<16x1xf32, #tpu.memory_space<vmem>>, %arg2: memref<1x512xf32, #tpu.memory_space<vmem>>, %arg3: memref<1x512xf32, #tpu.memory_space<vmem>>, %arg4: memref<16x512xf32, #tpu.memory_space<vmem>>) attributes {dimension_semantics = [#tpu.dimension_semantics<parallel>], iteration_bounds = array<i64: 1>, scalar_prefetch = 0 : i64, scratch_operands = 0 : i64, tpu.core_type = #tpu.core_type<tc>, window_params = [{transform_indices = @transform_0, window_bounds = array<i64: 16, 1>}, {pipeline_mode = #tpu.pipeline_mode<synchronous>, transform_indices = @transform_1, window_bounds = array<i64: 1, 512>}, {pipeline_mode = #tpu.pipeline_mode<synchronous>, transform_indices = @transform_2, window_bounds = array<i64: 1, 512>}, {transform_indices = @transform_3, window_bounds = array<i64: 16, 512>}]} {
    %c0 = arith.constant 0 : index
    %c0_0 = arith.constant 0 : index
    %0 = vector.load %arg1[%c0, %c0_0] : memref<16x1xf32, #tpu.memory_space<vmem>>, vector<16x1xf32>
    %c0_1 = arith.constant 0 : index
    %c0_2 = arith.constant 0 : index
    %1 = vector.load %arg2[%c0_1, %c0_2] : memref<1x512xf32, #tpu.memory_space<vmem>>, vector<1x512xf32>
    %2 = vector.broadcast %0 : vector<16x1xf32> to vector<16x512xf32>
    %3 = vector.broadcast %1 : vector<1x512xf32> to vector<16x512xf32>
    %4 = arith.mulf %2, %3 : vector<16x512xf32>
    %c0_3 = arith.constant 0 : index
    %c0_4 = arith.constant 0 : index
    %5 = vector.load %arg3[%c0_3, %c0_4] : memref<1x512xf32, #tpu.memory_space<vmem>>, vector<1x512xf32>
    %6 = vector.broadcast %5 : vector<1x512xf32> to vector<16x512xf32>
    %7 = arith.addf %4, %6 : vector<16x512xf32>
    %8 = math.sin %7 : vector<16x512xf32>
    %c0_5 = arith.constant 0 : index
    %c0_6 = arith.constant 0 : index
    %9 = vector.load %arg4[%c0_5, %c0_6] : memref<16x512xf32, #tpu.memory_space<vmem>>, vector<16x512xf32>
    tpu.vector_store %arg4[%c0_5, %c0_6], %8 {strides = array<i32>} : memref<16x512xf32, #tpu.memory_space<vmem>>, vector<16x512xf32>,
    return
  }
  func.func @transform_0(%arg0: i32) -> (i32, i32) {
    %c0_i32 = arith.constant 0 : i32
    %c0_i32_0 = arith.constant 0 : i32
    return %arg0, %c0_i32 : i32, i32
  }
  func.func @transform_1(%arg0: i32) -> (i32, i32) {
    %c0_i32 = arith.constant 0 : i32
    %c0_i32_0 = arith.constant 0 : i32
    %c0_i32_1 = arith.constant 0 : i32
    return %c0_i32, %c0_i32_0 : i32, i32
  }
  func.func @transform_2(%arg0: i32) -> (i32, i32) {
    %c0_i32 = arith.constant 0 : i32
    %c0_i32_0 = arith.constant 0 : i32
    %c0_i32_1 = arith.constant 0 : i32
    return %c0_i32, %c0_i32_0 : i32, i32
  }
  func.func @transform_3(%arg0: i32) -> (i32, i32) {
    %c0_i32 = arith.constant 0 : i32
    %c0_i32_0 = arith.constant 0 : i32
    return %arg0, %c0_i32 : i32, i32
  }
}

</mosaic_0001>

<bundles_post_ra>
// kernel: tpu_custom_call.1
= control target key start
LH: loop header
LB: loop body
LE: loop exit
PB: predicated region body
PF: predicated region fallthrough
CT: control target
= control target key end

     0   :  { %s2286_s0 = inlined_call_operand.vmem [shape: f32[16,1], index: 0, kind: input, shape index: {}]   ;;  %s2287_s1 = inlined_call_operand.vmem [shape: f32[1,512], index: 1, kind: input, shape index: {}]   ;;  %s2288_s2 = inlined_call_operand.vmem [shape: f32[1,512], index: 2, kind: input, shape index: {}]   ;;  %s2289_s3 = inlined_call_operand.hbm [shape: f32[16,512], index: 3, kind: output, shape index: {}]  }
   0x1   :  { %v15_v0 = vld [vmem:[%s2286_s0] sm:$0xff] }
   0x2   :  { %8 = vsyncpa [#allocation3], 0  ;;  %v1390_v1 = vmov 0   ;;  %v16_v2 = vld [vmem:[%s2286_s0 + $0x8] sm:$0xff]  ;;  %v17_v3 = vld [vmem:[%s2287_s1] sm:$0xf] }
   0x3   :  { %1363 = vset.pattern.permute.xlu0 %v1390_v1  ;;  %v45_v4 = vld [vmem:[%s2288_s2] sm:$0xf]  ;;  %v29_v5 = vperm.slane %v17_v3, 0  ;;  %v30_v6 = vperm.slane %v17_v3, 1  ;;  %v32_v7 = vperm.slane %v17_v3, 3  ;;  %v31_v15 = vperm.slane %v17_v3, 2 }
   0x4   :  { %20 = vperm.xlu0 %1363, %v15_v0   ;;  %v47_v8 = vperm.slane %v45_v4, 0  ;;  %v48_v9 = vperm.slane %v45_v4, 1  ;;  %v50_v10 = vperm.slane %v45_v4, 3  ;;  %v49_v22 = vperm.slane %v45_v4, 2  ;;  %s1397_s0 = smov [#allocation2]   ;;  %s1317_s21 = sshll.u32 %s2289_s3, 4  ;;  %s1318_s21 = int_to_ptr.hbm [resolvable:$true] %s1317_s21 }
   0x5   :  { %v1391_v56 = vmov 683565275   ;;  %v1392_v58 = vmov 2475754826   ;;  %v1393_v62 = vmov 2131351028  }
   0x6   :  { %s1315_s1 = sshll.u32 %s1397_s0, 4  ;;  %s1398_s22 = smov 512   ;;  %s1316_s1 = int_to_ptr.vmem [resolvable:$true] %s1315_s1 }
   0x7   :  { %s1399_s23 = smov 32  }
   0xc   :  { %25 = vperm.xlu0 %1363, %v16_v2   ;;  %v1394_v2 = vmov 2102212464  }
  0x76   :  { %v21_v11 = vpop.permute.xlu0 %20 }
  0x77   :  { %v37_v12 = vmul.f32 %v29_v5, %v21_v11  ;;  %v38_v13 = vmul.f32 %v30_v6, %v21_v11  ;;  %v40_v14 = vmul.f32 %v32_v7, %v21_v11  ;;  %v39_v21 = vmul.f32 %v31_v15, %v21_v11 }
  0x79   :  { %v1433_v16 = vadd.f32 %v47_v8, %v37_v12  ;;  %v1435_v17 = vadd.f32 %v48_v9, %v38_v13  ;;  %v1437_v18 = vadd.f32 %v50_v10, %v40_v14  ;;  %v1447_v34 = vadd.f32 %v49_v22, %v39_v21 }
  0x7b   :  { %v63_v19 = vand.u32 2147483647, %v1433_v16  ;;  %v66_v20 = vand.u32 2139095040, %v1433_v16  ;;  %v218_v23 = vand.u32 2147483647, %v1435_v17  ;;  %v221_v24 = vand.u32 2139095040, %v1435_v17 }
  0x7c   :  { %v376_v46 = vand.u32 2139095040, %v1447_v34 }
  0x7d   :  { %v67_v25 = vshrl.u32 %v66_v20, 23  ;;  %v70_v26 = vand.u32 8388607, %v63_v19  ;;  %v222_v28 = vshrl.u32 %v221_v24, 23  ;;  %v225_v29 = vand.u32 8388607, %v218_v23 }
  0x7e   :  { %v26_v27 = vpop.permute.xlu0 %25  ;;  %v1467_v54 = vshrl.u32 %v376_v46, 23 }
  0x7f   :  { %v41_v30 = vmul.f32 %v29_v5, %v26_v27  ;;  %v42_v31 = vmul.f32 %v30_v6, %v26_v27  ;;  %v43_v32 = vmul.f32 %v31_v15, %v26_v27  ;;  %v44_v33 = vmul.f32 %v32_v7, %v26_v27 }
  0x80   :  { %v1329_v35 = vadd.s32 4294967169, %v67_v25  ;;  %v71_v36 = vor.u32 8388608, %v70_v26  ;;  %v1332_v37 = vadd.s32 4294967169, %v222_v28  ;;  %v226_v44 = vor.u32 8388608, %v225_v29 }
  0x81   :  { %v1449_v38 = vadd.f32 %v47_v8, %v41_v30  ;;  %v1451_v39 = vadd.f32 %v48_v9, %v42_v31  ;;  %v1453_v40 = vadd.f32 %v49_v22, %v43_v32  ;;  %v1455_v41 = vadd.f32 %v50_v10, %v44_v33 }
  0x82   :  { %v73_v42 = vadd.s32 1, %v1329_v35  ;;  %v228_v43 = vadd.s32 1, %v1332_v37  ;;  %v1457_v45 = vshll.u32 %v71_v36, 8  ;;  %v1460_v50 = vshll.u32 %v226_v44, 8 }
  0x83   :  { %v1395_v5 = vmov 920167782   ;;  %v1396_v8 = vmov 1326507024  }
  0x84   :  { %vm74_vm0 = vcmp.gt.s32.totalorder %v73_v42, 0  ;;  %vm229_vm1 = vcmp.gt.s32.totalorder %v228_v43, 0  ;;  %v1463_v52 = vand.u32 65535, %v1457_v45  ;;  %v113_v60 = vshrl.u32 %v1457_v45, 16 }
  0x85   :  { %v75_v47 = vsel %vm74_vm0, %v73_v42, 0  ;;  %v230_v48 = vsel %vm229_vm1, %v228_v43, 0 }
  0x86   :  { %v77_v49 = vand.u32 31, %v75_v47  ;;  %v1465_v53 = vand.u32 31, %v230_v48  ;;  %v1469_v55 = vshrl.u32 %v75_v47, 5  ;;  %v1514_v47 = vshrl.u32 %v230_v48, 5 }
  0x88   :  { %v78_v51 = vsub.s32 32, %v77_v49  ;;  %v80_v57 = vshll.u32 %v1391_v56, %v77_v49  ;;  %v83_v59 = vshll.u32 %v1392_v58, %v77_v49  ;;  %v86_v0 = vshll.u32 %v1393_v62, %v77_v49 }
  0x89   :  { %v89_v4 = vshll.u32 %v1394_v2, %v77_v49  ;;  %v92_v7 = vshll.u32 %v1395_v5, %v77_v49  ;;  %v1483_v13 = vsub.s32 32, %v1465_v53  ;;  %vm95_vm2 = vcmp.lt.s32.totalorder %v1469_v55, 1 }
  0x8a   :  { %v81_v61 = vshrl.u32 %v1392_v58, %v78_v51  ;;  %v84_v63 = vshrl.u32 %v1393_v62, %v78_v51  ;;  %v87_v3 = vshrl.u32 %v1394_v2, %v78_v51  ;;  %v90_v6 = vshrl.u32 %v1395_v5, %v78_v51 }
  0x8b   :  { %v93_v9 = vshrl.u32 %v1396_v8, %v78_v51  ;;  %vm96_vm3 = vcmp.lt.s32.totalorder %v1469_v55, 2  ;;  %v79_v20 = vshrl.u32 %v1391_v56, %v78_v51  ;;  %vm98_vm4 = vcmp.lt.s32.totalorder %v1469_v55, 4 }
  0x8c   :  { %v82_v10 = vor.u32 %v81_v61, %v80_v57  ;;  %v85_v11 = vor.u32 %v84_v63, %v83_v59  ;;  %v88_v12 = vor.u32 %v87_v3, %v86_v0  ;;  %v91_v14 = vor.u32 %v90_v6, %v89_v4 }
  0x8d   :  { %v94_v15 = vor.u32 %v93_v9, %v92_v7  ;;  %vm97_vm5 = vcmp.lt.s32.totalorder %v1469_v55, 3  ;;  %v235_v26 = vshll.u32 %v1391_v56, %v1465_v53  ;;  %v236_v30 = vshrl.u32 %v1392_v58, %v1483_v13 }
  0x8e   :  { %v103_v21 = vsel %vm95_vm2, %v82_v10, %v85_v11  ;;  %v107_v22 = vsel %vm95_vm2, %v85_v11, %v88_v12  ;;  %v104_v24 = vsel %vm98_vm4, %v91_v14, 920167782  ;;  %v100_v27 = vsel %vm98_vm4, %v88_v12, 2102212464 }
  0x8f   :  { %v108_v25 = vsel %vm98_vm4, %v94_v15, 1326507024  ;;  %v105_v28 = vsel %vm97_vm5, %v88_v12, %v104_v24  ;;  %v238_v33 = vshll.u32 %v1392_v58, %v1465_v53  ;;  %v239_v35 = vshrl.u32 %v1393_v62, %v1483_v13 }
  0x90   :  { %v109_v29 = vsel %vm97_vm5, %v91_v14, %v108_v25  ;;  %v106_v31 = vsel %vm96_vm3, %v103_v21, %v105_v28  ;;  %v99_v44 = vsel %vm95_vm2, %v79_v20, %v82_v10  ;;  %v101_v46 = vsel %vm97_vm5, %v85_v11, %v100_v27 }
  0x91   :  { %v110_v32 = vsel %vm96_vm3, %v107_v22, %v109_v29  ;;  %v136_v42 = vand.u32 65535, %v106_v31  ;;  %v137_v43 = vshrl.u32 %v106_v31, 16  ;;  %v1516_v49 = vor.u32 %v236_v30, %v235_v26 }
  0x92   :  { %v114_v36 = vand.u32 65535, %v110_v32  ;;  %v115_v37 = vshrl.u32 %v110_v32, 16  ;;  %v1519_v59 = vor.u32 %v239_v35, %v238_v33  ;;  %v242_v61 = vshrl.u32 %v1394_v2, %v1483_v13 }
  0x93   :  { %v139_v0 = vmul.u32 %v137_v43, %v1463_v52  ;;  %v140_v3 = vmul.u32 %v136_v42, %v113_v60  ;;  %v241_v4 = vshll.u32 %v1393_v62, %v1465_v53  ;;  %v138_v7 = vmul.u32 %v136_v42, %v1463_v52 }
  0x94   :  { %v117_v51 = vmul.u32 %v115_v37, %v1463_v52  ;;  %v118_v57 = vmul.u32 %v114_v36, %v113_v60  ;;  %v116_v63 = vmul.u32 %v114_v36, %v1463_v52  ;;  %v119_v48 = vmul.u32 %v115_v37, %v113_v60 }
  0x95   :  { %v141_v9 = vmul.u32 %v137_v43, %v113_v60  ;;  %v142_v14 = vshll.u32 %v139_v0, 16  ;;  %v144_v20 = vshll.u32 %v140_v3, 16  ;;  %v243_v21 = vor.u32 %v242_v61, %v241_v4 }
  0x96   :  { %v120_v6 = vshll.u32 %v117_v51, 16  ;;  %v121_v10 = vshrl.u32 %v117_v51, 16  ;;  %v122_v11 = vshll.u32 %v118_v57, 16  ;;  %v123_v12 = vshrl.u32 %v118_v57, 16 }
  0x97   :  { %vm146_vm7 = vc.u32 %v138_v7, %v142_v14  ;;  %v148_v24 = vadd.s32 %v142_v14, %v138_v7  ;;  %v245_v25 = vshrl.u32 %v1395_v5, %v1483_v13  ;;  %v244_v60 = vshll.u32 %v1394_v2, %v1465_v53 }
  0x98   :  { %vm124_vm6 = vc.u32 %v116_v63, %v120_v6  ;;  %v126_v15 = vadd.s32 %v120_v6, %v116_v63  ;;  %v147_v52 = vsel %vm146_vm7, 1, %v1390_v1  ;;  %v247_v29 = vshll.u32 %v1395_v5, %v1465_v53 }
  0x99   :  { %v125_v22 = vsel %vm124_vm6, 1, %v1390_v1  ;;  %v149_v28 = vadd.s32 %v147_v52, %v141_v9  ;;  %vm150_vm9 = vc.u32 %v148_v24, %v144_v20  ;;  %v246_v32 = vor.u32 %v245_v25, %v244_v60 }
  0x9a   :  { %v127_v26 = vadd.s32 %v125_v22, %v119_v48  ;;  %vm128_vm8 = vc.u32 %v126_v15, %v122_v11  ;;  %v151_v31 = vsel %vm150_vm9, 1, %v1390_v1  ;;  %v248_v33 = vshrl.u32 %v1396_v8, %v1483_v13 }
  0x9b   :  { %v129_v27 = vsel %vm128_vm8, 1, %v1390_v1  ;;  %v143_v35 = vshrl.u32 %v139_v0, 16  ;;  %v145_v36 = vshrl.u32 %v140_v3, 16  ;;  %v1540_v37 = vadd.s32 %v148_v24, %v144_v20 }
  0x9c   :  { %v131_v30 = vadd.s32 %v129_v27, %v127_v26  ;;  %v153_v42 = vadd.s32 %v151_v31, %v149_v28  ;;  %v249_v51 = vor.u32 %v248_v33, %v247_v29  ;;  %vm250_vm10 = vcmp.lt.s32.totalorder %v1514_v47, 1 }
  0x9d   :  { %vm253_vm11 = vcmp.lt.s32.totalorder %v1514_v47, 4  ;;  %vm252_vm12 = vcmp.lt.s32.totalorder %v1514_v47, 3  ;;  %v258_v53 = vsel %vm250_vm10, %v1516_v49, %v1519_v59  ;;  %vm251_vm13 = vcmp.lt.s32.totalorder %v1514_v47, 2 }
  0x9e   :  { %v132_v43 = vadd.s32 %v131_v30, %v121_v10  ;;  %v154_v57 = vadd.s32 %v153_v42, %v143_v35  ;;  %v259_v61 = vsel %vm253_vm11, %v246_v32, 920167782  ;;  %v262_v3 = vsel %vm250_vm10, %v1519_v59, %v243_v21 }
  0x9f   :  { %v260_v0 = vsel %vm252_vm12, %v243_v21, %v259_v61  ;;  %v102_v4 = vsel %vm96_vm3, %v99_v44, %v101_v46  ;;  %v263_v7 = vsel %vm253_vm11, %v249_v51, 1326507024  ;;  %v267_v10 = vand.u32 65535, %v1460_v50 }
  0xa0   :  { %v1551_v63 = vadd.s32 %v132_v43, %v123_v12  ;;  %v155_v48 = vadd.s32 %v154_v57, %v145_v36  ;;  %v261_v6 = vsel %vm251_vm13, %v258_v53, %v260_v0  ;;  %v264_v9 = vsel %vm252_vm12, %v246_v32, %v263_v7 }
  0xa1   :  { %v291_v11 = vand.u32 65535, %v261_v6  ;;  %v265_v55 = vsel %vm251_vm13, %v262_v3, %v264_v9  ;;  %v268_v44 = vshrl.u32 %v1460_v50, 16  ;;  %v292_v46 = vshrl.u32 %v261_v6, 16 }
  0xa2   :  { %vm158_vm14 = vc.u32 %v1551_v63, %v1540_v37  ;;  %v159_v12 = vadd.s32 1, %v155_v48  ;;  %v156_v14 = vmul.u32 %v1457_v45, %v102_v4  ;;  %v269_v15 = vand.u32 65535, %v265_v55 }
  0xa3   :  { %v270_v20 = vshrl.u32 %v265_v55, 16  ;;  %v373_v22 = vand.u32 2147483647, %v1447_v34  ;;  %v294_v25 = vmul.u32 %v292_v46, %v267_v10  ;;  %v295_v26 = vmul.u32 %v291_v11, %v268_v44 }
  0xa4   :  { %v160_v24 = vsel %vm158_vm14, %v159_v12, %v155_v48  ;;  %v1335_v52 = vadd.s32 4294967169, %v1467_v54  ;;  %v234_v27 = vshrl.u32 %v1391_v56, %v1483_v13  ;;  %v273_v29 = vmul.u32 %v269_v15, %v268_v44 }
  0xa5   :  { %v161_v60 = vadd.s32 %v160_v24, %v156_v14  ;;  %v272_v28 = vmul.u32 %v270_v20, %v267_v10  ;;  %v255_v30 = vsel %vm253_vm11, %v243_v21, 2102212464  ;;  %v293_v31 = vmul.u32 %v291_v11, %v267_v10 }
  0xa6   :  { %v296_v45 = vmul.u32 %v292_v46, %v268_v44  ;;  %v297_v32 = vshll.u32 %v294_v25, 16  ;;  %v271_v35 = vmul.u32 %v269_v15, %v267_v10  ;;  %v274_v36 = vmul.u32 %v270_v20, %v268_v44 }
  0xa7   :  { %v162_v33 = vadd.s32 536870912, %v161_v60  ;;  %v275_v42 = vshll.u32 %v272_v28, 16  ;;  %v277_v43 = vshll.u32 %v273_v29, 16  ;;  %v299_v51 = vshll.u32 %v295_v26, 16 }
  0xa8   :  { %vm301_vm15 = vc.u32 %v293_v31, %v297_v32  ;;  %v303_v54 = vadd.s32 %v297_v32, %v293_v31  ;;  %v380_v21 = vand.u32 8388607, %v373_v22  ;;  %v254_v4 = vsel %vm250_vm10, %v234_v27, %v1516_v49 }
  0xa9   :  { %v163_v57 = vshrl.u32 %v162_v33, 30  ;;  %vm279_vm0 = vc.u32 %v271_v35, %v275_v42  ;;  %v281_v53 = vadd.s32 %v275_v42, %v271_v35  ;;  %v302_v13 = vsel %vm301_vm15, 1, %v1390_v1 }
  0xaa   :  { %v280_v61 = vsel %vm279_vm0, 1, %v1390_v1  ;;  %v304_v0 = vadd.s32 %v302_v13, %v296_v45  ;;  %vm305_vm1 = vc.u32 %v303_v54, %v299_v51  ;;  %v256_v6 = vsel %vm252_vm12, %v1519_v59, %v255_v30 }
  0xab   :  { %v164_v3 = vshll.u32 %v163_v57, 30  ;;  %v282_v48 = vadd.s32 %v280_v61, %v274_v36  ;;  %vm283_vm2 = vc.u32 %v281_v53, %v277_v43  ;;  %v306_v9 = vsel %vm305_vm1, 1, %v1390_v1 }
  0xac   :  { %v284_v7 = vsel %vm283_vm2, 1, %v1390_v1  ;;  %v383_v10 = vadd.s32 1, %v1335_v52  ;;  %v276_v12 = vshrl.u32 %v272_v28, 16  ;;  %v308_v44 = vadd.s32 %v306_v9, %v304_v0 }
  0xad   :  { %v165_v11 = vsub.s32 %v161_v60, %v164_v3  ;;  %v286_v55 = vadd.s32 %v284_v7, %v282_v48  ;;  %v298_v46 = vshrl.u32 %v294_v25, 16  ;;  %v278_v49 = vshrl.u32 %v273_v29, 16 }
  0xae   :  { %vm384_vm3 = vcmp.gt.s32.totalorder %v383_v10, 0  ;;  %v257_v20 = vsel %vm251_vm13, %v254_v4, %v256_v6  ;;  %v300_v24 = vshrl.u32 %v295_v26, 16  ;;  %v187_v31 = vsub.s32 4, %v163_v57 }
  0xaf   :  { %vm166_vm4 = vcmp.lt.s32.totalorder %v165_v11, 0  ;;  %v167_v14 = vsub.s32 0, %v165_v11  ;;  %v287_v15 = vadd.s32 %v286_v55, %v276_v12  ;;  %v309_v59 = vadd.s32 %v308_v44, %v298_v46 }
  0xb0   :  { %v385_v27 = vsel %vm384_vm3, %v383_v10, 0  ;;  %v381_v52 = vor.u32 8388608, %v380_v21  ;;  %v1596_v28 = vadd.s32 %v303_v54, %v299_v51  ;;  %vm65_vm5 = vcmp.lt.s32.totalorder %v1433_v16, 0 }
  0xb1   :  { %v168_v30 = vsel %vm166_vm4, %v167_v14, %v165_v11  ;;  %v1594_v45 = vadd.s32 %v287_v15, %v278_v49  ;;  %v310_v25 = vadd.s32 %v309_v59, %v300_v24  ;;  %v387_v32 = vand.u32 31, %v385_v27 }
  0xb2   :  { %v169_v60 = vclz %v168_v30  ;;  %v157_v29 = vadd.s32 %v1540_v37, %v1551_v63  ;;  %v311_v47 = vmul.u32 %v1460_v50, %v257_v20  ;;  %v188_v36 = vsel %vm65_vm5, %v187_v31, %v163_v57 }
  0xb3   :  { %vm313_vm6 = vc.u32 %v1594_v45, %v1596_v28  ;;  %v314_v33 = vadd.s32 1, %v310_v25  ;;  %v388_v35 = vsub.s32 32, %v387_v32  ;;  %v1606_v42 = vshrl.u32 %v385_v27, 5 }
  0xb4   :  { %v1330_v26 = vadd.s32 4294967294, %v169_v60  ;;  %v390_v43 = vshll.u32 %v1391_v56, %v387_v32  ;;  %v1609_v51 = vshll.u32 %v381_v52, 8  ;;  %v393_v50 = vshll.u32 %v1392_v58, %v387_v32 }
  0xb5   :  { %v315_v54 = vsel %vm313_vm6, %v314_v33, %v310_v25  ;;  %v391_v37 = vshrl.u32 %v1392_v58, %v388_v35  ;;  %v394_v13 = vshrl.u32 %v1393_v62, %v388_v35  ;;  %v396_v61 = vshll.u32 %v1393_v62, %v387_v32 }
  0xb6   :  { %vm1331_vm7 = vcmp.lt.s32.totalorder %v1330_v26, 0  ;;  %v316_v53 = vadd.s32 %v315_v54, %v311_v47  ;;  %v397_v21 = vshrl.u32 %v1394_v2, %v388_v35  ;;  %v399_v3 = vshll.u32 %v1394_v2, %v387_v32 }
  0xb7   :  { %v172_v63 = vsel %vm1331_vm7, 0, %v1330_v26  ;;  %v392_v6 = vor.u32 %v391_v37, %v390_v43  ;;  %v400_v7 = vshrl.u32 %v1395_v5, %v388_v35  ;;  %v1618_v12 = vor.u32 %v394_v13, %v393_v50 }
  0xb8   :  { %v173_v0 = vsub.s32 32, %v172_v63  ;;  %v177_v57 = vsub.s32 4294967266, %v172_v63  ;;  %v174_v4 = vshll.u32 %v165_v11, %v172_v63  ;;  %v317_v48 = vadd.s32 536870912, %v316_v53 }
  0xb9   :  { %v403_v55 = vshrl.u32 %v1396_v8, %v388_v35  ;;  %vm1623_vm8 = vcmp.le.f32.partialorder %v63_v19, 0.7853982  ;;  %v401_v14 = vor.u32 %v400_v7, %v399_v3  ;;  %v398_v15 = vor.u32 %v397_v21, %v396_v61 }
  0xba   :  { %v175_v9 = vshrl.u32 %v157_v29, %v173_v0  ;;  %v178_v10 = vadd.s32 127, %v177_v57  ;;  %v1627_v46 = vshrl.u32 %v317_v48, 30  ;;  %v402_v20 = vshll.u32 %v1395_v5, %v387_v32 }
  0xbb   :  { %v190_v24 = vsel %vm1623_vm8, 0, %v188_v36  ;;  %vm405_vm9 = vcmp.lt.s32.totalorder %v1606_v42, 1  ;;  %v422_v19 = vand.u32 65535, %v1609_v51  ;;  %vm408_vm10 = vcmp.lt.s32.totalorder %v1606_v42, 4 }
  0xbc   :  { %v176_v11 = vor.u32 %v175_v9, %v174_v4  ;;  %v179_v49 = vshll.u32 %v178_v10, 23  ;;  %v319_v59 = vshll.u32 %v1627_v46, 30  ;;  %v404_v30 = vor.u32 %v403_v55, %v402_v20 }
  0xbd   :  { %v413_v31 = vsel %vm405_vm9, %v392_v6, %v1618_v12  ;;  %vm407_vm11 = vcmp.lt.s32.totalorder %v1606_v42, 3  ;;  %v414_v60 = vsel %vm408_vm10, %v401_v14, 920167782  ;;  %v423_v25 = vshrl.u32 %v1609_v51, 16 }
  0xbe   :  { %v180_v27 = vor.u32 4788187, %v179_v49  ;;  %v1639_v52 = vsub.s32 %v316_v53, %v319_v59  ;;  %v183_v29 = vcvt.s32.f32 %v176_v11  ;;  %vm406_vm12 = vcmp.lt.s32.totalorder %v1606_v42, 2 }
  0xbf   :  { %v415_v47 = vsel %vm407_vm11, %v398_v15, %v414_v60  ;;  %v207_v26 = vadd.s32 3, %v190_v24  ;;  %v417_v54 = vsel %vm405_vm9, %v1618_v12, %v398_v15  ;;  %v418_v37 = vsel %vm408_vm10, %v404_v30, 1326507024 }
  0xc0   :  { %v181_v32 = vand.u32 2147483647, %v180_v27  ;;  %vm321_vm13 = vcmp.lt.s32.totalorder %v1639_v52, 0  ;;  %v322_v33 = vsub.s32 0, %v1639_v52  ;;  %v416_v36 = vsel %vm406_vm12, %v413_v31, %v415_v47 }
  0xc1   :  { %v528_v50 = vand.u32 2147483647, %v1437_v18  ;;  %v389_v53 = vshrl.u32 %v1391_v56, %v388_v35  ;;  %v419_v13 = vsel %vm407_vm11, %v401_v14, %v418_v37  ;;  %v446_v61 = vand.u32 65535, %v416_v36 }
  0xc2   :  { %v184_v43 = vmul.f32 %v183_v29, %v181_v32  ;;  %v323_v63 = vsel %vm321_vm13, %v322_v33, %v1639_v52  ;;  %v420_v21 = vsel %vm406_vm12, %v417_v54, %v419_v13  ;;  %v447_v3 = vshrl.u32 %v416_v36, 16 }
  0xc3   :  { %v324_v57 = vclz %v323_v63  ;;  %v1664_v4 = vand.u32 3, %v207_v26  ;;  %v312_v48 = vadd.s32 %v1596_v28, %v1594_v45  ;;  %v342_v7 = vsub.s32 4, %v1627_v46 }
  0xc4   :  { %v185_v0 = vxor.u32 2147483648, %v184_v43  ;;  %v424_v9 = vand.u32 65535, %v420_v21  ;;  %v1673_v55 = vsel %vm405_vm9, %v389_v53, %v392_v6  ;;  %v425_v14 = vshrl.u32 %v420_v21, 16 }
  0xc5   :  { %v1333_v10 = vadd.s32 4294967294, %v324_v57  ;;  %v1682_v45 = vsel %vm408_vm10, %v398_v15, 2102212464  ;;  %v448_v49 = vmul.u32 %v446_v61, %v422_v19  ;;  %v1686_v59 = vmul.u32 %v447_v3, %v422_v19 }
  0xc6   :  { %v186_v35 = vsel %vm65_vm5, %v185_v0, %v184_v43  ;;  %v428_v28 = vmul.u32 %v424_v9, %v423_v25  ;;  %v427_v24 = vmul.u32 %v425_v14, %v422_v19  ;;  %v426_v27 = vmul.u32 %v424_v9, %v422_v19 }
  0xc7   :  { %v1678_v11 = vsel %vm1623_vm8, %v1433_v16, %v186_v35  ;;  %vm1334_vm14 = vcmp.lt.s32.totalorder %v1333_v10, 0  ;;  %v429_v30 = vmul.u32 %v425_v14, %v423_v25  ;;  %v1688_v31 = vmul.u32 %v446_v61, %v423_v25 }
  0xc8   :  { %v191_v20 = vmul.f32 %v1678_v11, %v1678_v11  ;;  %v327_v6 = vsel %vm1334_vm14, 0, %v1333_v10  ;;  %v432_v29 = vshll.u32 %v428_v28, 16  ;;  %vm220_vm15 = vcmp.lt.s32.totalorder %v1435_v17, 0 }
  0xc9   :  { %v328_v32 = vsub.s32 32, %v327_v6  ;;  %v332_v15 = vsub.s32 4294967266, %v327_v6  ;;  %v430_v47 = vshll.u32 %v427_v24, 16  ;;  %v433_v26 = vshrl.u32 %v428_v28, 16 }
  0xca   :  { %v192_v44 = vmul.f32 -0.001358992, %v191_v20  ;;  %v199_v60 = vmul.f32 -0.00019511016, %v191_v20  ;;  %v451_v33 = vmul.u32 %v447_v3, %v423_v25  ;;  %v329_v54 = vshll.u32 %v1639_v52, %v327_v6 }
  0xcb   :  { %v330_v37 = vshrl.u32 %v312_v48, %v328_v32  ;;  %v333_v63 = vadd.s32 127, %v332_v15  ;;  %vm434_vm0 = vc.u32 %v426_v27, %v430_v47  ;;  %v436_v19 = vadd.s32 %v430_v47, %v426_v27 }
  0xcc   :  { %v193_v36 = vadd.f32 0.041655596, %v192_v44  ;;  %v200_v43 = vadd.f32 0.008332121, %v199_v60  ;;  %v452_v53 = vshll.u32 %v1686_v59, 16  ;;  %v435_v57 = vsel %vm434_vm0, 1, %v1390_v1 }
  0xcd   :  { %v331_v0 = vor.u32 %v330_v37, %v329_v54  ;;  %vm1696_vm1 = vcmp.le.f32.partialorder %v218_v23, 0.7853982  ;;  %v334_v25 = vshll.u32 %v333_v63, 23  ;;  %v431_v3 = vshrl.u32 %v427_v24, 16 }
  0xce   :  { %v194_v13 = vmul.f32 %v193_v36, %v191_v20  ;;  %v201_v61 = vmul.f32 %v200_v43, %v191_v20  ;;  %v437_v52 = vadd.s32 %v435_v57, %v429_v30  ;;  %vm438_vm2 = vc.u32 %v436_v19, %v432_v29 }
  0xcf   :  { %v439_v35 = vsel %vm438_vm2, 1, %v1390_v1  ;;  %v454_v10 = vshll.u32 %v1688_v31, 16  ;;  %vm210_vm3 = vcmp.eq.s32.totalorder %v1664_v4, 0  ;;  %vm213_vm4 = vcmp.eq.s32.totalorder %v1664_v4, 2 }
  0xd0   :  { %v195_v48 = vadd.f32 -0.4999988, %v194_v13  ;;  %v202_v9 = vadd.f32 -0.16666654, %v201_v61  ;;  %v335_v14 = vor.u32 4788187, %v334_v25  ;;  %v441_v28 = vadd.s32 %v439_v35, %v437_v52 }
  0xd1   :  { %vm456_vm5 = vc.u32 %v448_v49, %v452_v53  ;;  %v458_v23 = vadd.s32 %v452_v53, %v448_v49  ;;  %vm209_vm6 = vcmp.lt.s32.totalorder %v1664_v4, 2  ;;  %v338_v24 = vcvt.s32.f32 %v331_v0 }
  0xd2   :  { %v196_v6 = vmul.f32 %v195_v48, %v191_v20  ;;  %v203_v27 = vmul.f32 %v202_v9, %v191_v20  ;;  %v457_v30 = vsel %vm456_vm5, 1, %v1390_v1  ;;  %vm206_vm7 = vweird.f32 %v1433_v16 }
  0xd3   :  { %v336_v44 = vand.u32 2147483647, %v335_v14  ;;  %v442_v60 = vadd.s32 %v441_v28, %v431_v3  ;;  %v459_v32 = vadd.s32 %v457_v30, %v451_v33  ;;  %vm460_vm8 = vc.u32 %v458_v23, %v454_v10 }
  0xd4   :  { %v197_v29 = vadd.f32 1.0, %v196_v6  ;;  %v204_v15 = vadd.f32 1.0, %v203_v27  ;;  %v343_v49 = vsel %vm220_vm15, %v342_v7, %v1627_v46  ;;  %v461_v20 = vsel %vm460_vm8, 1, %v1390_v1 }
  0xd5   :  { %v339_v47 = vmul.f32 %v338_v24, %v336_v44  ;;  %v443_v36 = vadd.s32 %v442_v60, %v433_v26  ;;  %v453_v43 = vshrl.u32 %v1686_v59, 16  ;;  %v463_v54 = vadd.s32 %v461_v20, %v459_v32 }
  0xd6   :  { %v205_v37 = vmul.f32 %v204_v15, %v1678_v11  ;;  %v214_v63 = vxor.u32 2147483648, %v197_v29  ;;  %v411_v33 = vsel %vm407_vm11, %v1618_v12, %v1682_v45  ;;  %v531_v19 = vand.u32 2139095040, %v1437_v18 }
  0xd7   :  { %v340_v53 = vxor.u32 2147483648, %v339_v47  ;;  %v455_v46 = vshrl.u32 %v1688_v31, 16  ;;  %v462_v7 = vadd.s32 %v458_v23, %v454_v10  ;;  %v464_v13 = vadd.s32 %v463_v54, %v453_v43 }
  0xd8   :  { %v211_v61 = vxor.u32 2147483648, %v205_v37  ;;  %v345_v59 = vsel %vm1696_vm1, 0, %v343_v49  ;;  %v532_v26 = vshrl.u32 %v531_v19, 23  ;;  %v535_v11 = vand.u32 8388607, %v528_v50 }
  0xd9   :  { %v341_v0 = vsel %vm220_vm15, %v340_v53, %v339_v47  ;;  %v412_v12 = vsel %vm406_vm12, %v1673_v55, %v411_v33  ;;  %v465_v45 = vadd.s32 %v464_v13, %v455_v46  ;;  %vm468_vm9 = vc.u32 %v443_v36, %v462_v7 }
  0xda   :  { %v212_v31 = vsel %vm210_vm3, %v197_v29, %v211_v61  ;;  %v215_v57 = vsel %vm213_vm4, %v214_v63, %v205_v37  ;;  %v344_v25 = vsel %vm1696_vm1, %v1435_v17, %v341_v0  ;;  %v1338_v3 = vadd.s32 4294967169, %v532_v26 }
  0xdb   :  { %v216_v52 = vsel %vm209_vm6, %v212_v31, %v215_v57  ;;  %v346_v48 = vmul.f32 %v344_v25, %v344_v25  ;;  %v362_v9 = vadd.s32 3, %v345_v59  ;;  %v469_v42 = vadd.s32 1, %v465_v45 }
  0xdc   :  { %v217_v55 = vsel %vm206_vm7, nan, %v216_v52  ;;  %v466_v35 = vmul.u32 %v1609_v51, %v412_v12  ;;  %v536_v10 = vor.u32 8388608, %v535_v11  ;;  %v538_v14 = vadd.s32 1, %v1338_v3 }
  0xdd   :  { %v347_v28 = vmul.f32 -0.001358992, %v346_v48  ;;  %v354_v23 = vmul.f32 -0.00019511016, %v346_v48  ;;  %v470_v6 = vsel %vm468_vm9, %v469_v42, %v465_v45  ;;  %1303 = vst [vmem:[#allocation2] sm:$0xff] %v217_v55  ;;  %v363_v30 = vand.u32 3, %v362_v9 }
  0xde   :  { %v471_v21 = vadd.s32 %v470_v6, %v466_v35  ;;  %vm539_vm10 = vcmp.gt.s32.totalorder %v538_v14, 0  ;;  %v1742_v32 = vshll.u32 %v536_v10, 8  ;;  %v1746_v47 = vadd.s32 %v462_v7, %v443_v36 }
  0xdf   :  { %v348_v27 = vadd.f32 0.041655596, %v347_v28  ;;  %v355_v24 = vadd.f32 0.008332121, %v354_v23  ;;  %v540_v4 = vsel %vm539_vm10, %v538_v14, 0  ;;  %vm365_vm11 = vcmp.eq.s32.totalorder %v363_v30, 0 }
  0xe0   :  { %v472_v44 = vadd.s32 536870912, %v471_v21  ;;  %v542_v60 = vand.u32 31, %v540_v4  ;;  %vm368_vm12 = vcmp.eq.s32.totalorder %v363_v30, 2  ;;  %v1750_v54 = vand.u32 65535, %v1742_v32 }
  0xe1   :  { %v349_v16 = vmul.f32 %v348_v27, %v346_v48  ;;  %v356_v29 = vmul.f32 %v355_v24, %v346_v48  ;;  %v683_v37 = vand.u32 2147483647, %v1449_v38  ;;  %vm364_vm13 = vcmp.lt.s32.totalorder %v363_v30, 2 }
  0xe2   :  { %v1744_v15 = vshrl.u32 %v472_v44, 30  ;;  %v543_v51 = vsub.s32 32, %v542_v60  ;;  %v1754_v19 = vshrl.u32 %v1742_v32, 16  ;;  %v686_v53 = vand.u32 2139095040, %v1449_v38 }
  0xe3   :  { %v350_v49 = vadd.f32 -0.4999988, %v349_v16  ;;  %v357_v20 = vadd.f32 -0.16666654, %v356_v29  ;;  %vm361_vm14 = vweird.f32 %v1435_v17  ;;  %v1760_v36 = vshrl.u32 %v540_v4, 5 }
  0xe4   :  { %v474_v43 = vshll.u32 %v1744_v15, 30  ;;  %v546_v7 = vshrl.u32 %v1392_v58, %v543_v51  ;;  %v549_v13 = vshrl.u32 %v1393_v62, %v543_v51  ;;  %v545_v26 = vshll.u32 %v1391_v56, %v542_v60 }
  0xe5   :  { %v351_v63 = vmul.f32 %v350_v49, %v346_v48  ;;  %v358_v33 = vmul.f32 %v357_v20, %v346_v48  ;;  %v555_v11 = vshrl.u32 %v1395_v5, %v543_v51  ;;  %v548_v12 = vshll.u32 %v1392_v58, %v542_v60 }
  0xe6   :  { %v1758_v46 = vsub.s32 %v471_v21, %v474_v43  ;;  %v552_v45 = vshrl.u32 %v1394_v2, %v543_v51  ;;  %v551_v3 = vshll.u32 %v1393_v62, %v542_v60  ;;  %v554_v52 = vshll.u32 %v1394_v2, %v542_v60 }
  0xe7   :  { %v352_v61 = vadd.f32 1.0, %v351_v63  ;;  %v359_v59 = vadd.f32 1.0, %v358_v33  ;;  %v547_v9 = vor.u32 %v546_v7, %v545_v26  ;;  %v550_v42 = vor.u32 %v549_v13, %v548_v12 }
  0xe8   :  { %vm476_vm15 = vcmp.lt.s32.totalorder %v1758_v46, 0  ;;  %v477_v0 = vsub.s32 0, %v1758_v46  ;;  %v558_v55 = vshrl.u32 %v1396_v8, %v543_v51  ;;  %vm375_vm0 = vcmp.lt.s32.totalorder %v1447_v34, 0 }
  0xe9   :  { %v360_v31 = vmul.f32 %v359_v59, %v344_v25  ;;  %v369_v57 = vxor.u32 2147483648, %v352_v61  ;;  %v556_v14 = vor.u32 %v555_v11, %v554_v52  ;;  %v1777_v28 = vand.u32 8388607, %v683_v37 }
  0xea   :  { %v478_v48 = vsel %vm476_vm15, %v477_v0, %v1758_v46  ;;  %v497_v25 = vsub.s32 4, %v1744_v15  ;;  %v553_v23 = vor.u32 %v552_v45, %v551_v3  ;;  %v557_v6 = vshll.u32 %v1395_v5, %v542_v60 }
  0xeb   :  { %v366_v35 = vxor.u32 2147483648, %v360_v31  ;;  %v479_v10 = vclz %v478_v48  ;;  %v687_v21 = vshrl.u32 %v686_v53, 23  ;;  %v370_v24 = vsel %vm368_vm12, %v369_v57, %v360_v31 }
  0xec   :  { %vm560_vm1 = vcmp.lt.s32.totalorder %v1760_v36, 1  ;;  %v559_v16 = vor.u32 %v558_v55, %v557_v6  ;;  %vm563_vm2 = vcmp.lt.s32.totalorder %v1760_v36, 4  ;;  %vm562_vm4 = vcmp.lt.s32.totalorder %v1760_v36, 3 }
  0xed   :  { %v367_v27 = vsel %vm365_vm11, %v352_v61, %v366_v35  ;;  %v1336_v4 = vadd.s32 4294967294, %v479_v10  ;;  %v568_v29 = vsel %vm560_vm1, %v547_v9, %v550_v42  ;;  %v569_v60 = vsel %vm563_vm2, %v556_v14, 920167782 }
  0xee   :  { %v371_v44 = vsel %vm364_vm13, %v367_v27, %v370_v24  ;;  %v544_v43 = vshrl.u32 %v1391_v56, %v543_v51  ;;  %vm561_vm5 = vcmp.lt.s32.totalorder %v1760_v36, 2  ;;  %v570_v30 = vsel %vm562_vm4, %v553_v23, %v569_v60 }
  0xef   :  { %v372_v49 = vsel %vm361_vm14, nan, %v371_v44  ;;  %vm1337_vm3 = vcmp.lt.s32.totalorder %v1336_v4, 0  ;;  %v571_v17 = vsel %vm561_vm5, %v568_v29, %v570_v30  ;;  %v572_v53 = vsel %vm560_vm1, %v550_v42, %v553_v23 }
  0xf0   :  { %v482_v20 = vsel %vm1337_vm3, 0, %v1336_v4  ;;  %1304 = vst [vmem:[#allocation2 + $0x8] sm:$0xff] %v372_v49  ;;  %v565_v7 = vsel %vm563_vm2, %v553_v23, 2102212464  ;;  %v573_v51 = vsel %vm563_vm2, %v559_v16, 1326507024  ;;  %v498_v45 = vsel %vm375_vm0, %v497_v25, %v1744_v15 }
  0xf1   :  { %v483_v63 = vsub.s32 32, %v482_v20  ;;  %v487_v33 = vsub.s32 4294967266, %v482_v20  ;;  %v601_v13 = vand.u32 65535, %v571_v17  ;;  %v602_v61 = vshrl.u32 %v571_v17, 16 }
  0xf2   :  { %vm1807_vm6 = vcmp.le.f32.partialorder %v373_v22, 0.7853982  ;;  %v484_v26 = vshll.u32 %v1758_v46, %v482_v20  ;;  %v574_v12 = vsel %vm562_vm4, %v556_v14, %v573_v51  ;;  %v566_v55 = vsel %vm562_vm4, %v550_v42, %v565_v7 }
  0xf3   :  { %v485_v11 = vshrl.u32 %v1746_v47, %v483_v63  ;;  %v488_v0 = vadd.s32 127, %v487_v33  ;;  %v575_v31 = vsel %vm561_vm5, %v572_v53, %v574_v12  ;;  %v604_v22 = vmul.u32 %v602_v61, %v1750_v54 }
  0xf4   :  { %v605_v57 = vmul.u32 %v601_v13, %v1754_v19  ;;  %v579_v46 = vand.u32 65535, %v575_v31  ;;  %v580_v48 = vshrl.u32 %v575_v31, 16  ;;  %v564_v47 = vsel %vm560_vm1, %v544_v43, %v547_v9 }
  0xf5   :  { %v486_v3 = vor.u32 %v485_v11, %v484_v26  ;;  %v489_v52 = vshll.u32 %v488_v0, 23  ;;  %v603_v35 = vmul.u32 %v601_v13, %v1750_v54  ;;  %v607_v15 = vshll.u32 %v604_v22, 16 }
  0xf6   :  { %v582_v14 = vmul.u32 %v580_v48, %v1750_v54  ;;  %v606_v25 = vmul.u32 %v602_v61, %v1754_v19  ;;  %v1341_v23 = vadd.s32 4294967169, %v687_v21  ;;  %v583_v27 = vmul.u32 %v579_v46, %v1754_v19 }
  0xf7   :  { %v490_v10 = vor.u32 4788187, %v489_v52  ;;  %v493_v6 = vcvt.s32.f32 %v486_v3  ;;  %v609_v24 = vshll.u32 %v605_v57, 16  ;;  %vm611_vm7 = vc.u32 %v603_v35, %v607_v15 }
  0xf8   :  { %v581_v9 = vmul.u32 %v579_v46, %v1750_v54  ;;  %v585_v44 = vshll.u32 %v582_v14, 16  ;;  %v612_v42 = vsel %vm611_vm7, 1, %v1390_v1  ;;  %v584_v16 = vmul.u32 %v580_v48, %v1754_v19 }
  0xf9   :  { %v491_v4 = vand.u32 2147483647, %v490_v10  ;;  %v587_v29 = vshll.u32 %v583_v27, 16  ;;  %v613_v49 = vadd.s32 %v607_v15, %v603_v35  ;;  %v614_v60 = vadd.s32 %v612_v42, %v606_v25 }
  0xfa   :  { %vm589_vm8 = vc.u32 %v581_v9, %v585_v44  ;;  %v591_v43 = vadd.s32 %v585_v44, %v581_v9  ;;  %v693_v21 = vadd.s32 1, %v1341_v23  ;;  %v500_v30 = vsel %vm1807_vm6, 0, %v498_v45 }
  0xfb   :  { %v494_v20 = vmul.f32 %v493_v6, %v491_v4  ;;  %v567_v63 = vsel %vm561_vm5, %v564_v47, %v566_v55  ;;  %v590_v54 = vsel %vm589_vm8, 1, %v1390_v1  ;;  %vm615_vm9 = vc.u32 %v613_v49, %v609_v24 }
  0xfc   :  { %v592_v17 = vadd.s32 %v590_v54, %v584_v16  ;;  %vm593_vm10 = vc.u32 %v591_v43, %v587_v29  ;;  %v616_v19 = vsel %vm615_vm9, 1, %v1390_v1  ;;  %v608_v7 = vshrl.u32 %v604_v22, 16 }
  0xfd   :  { %v495_v33 = vxor.u32 2147483648, %v494_v20  ;;  %v594_v53 = vsel %vm593_vm10, 1, %v1390_v1  ;;  %v618_v51 = vadd.s32 %v616_v19, %v614_v60  ;;  %vm694_vm11 = vcmp.gt.s32.totalorder %v693_v21, 0 }
  0xfe   :  { %v586_v61 = vshrl.u32 %v582_v14, 16  ;;  %v596_v26 = vadd.s32 %v594_v53, %v592_v17  ;;  %v695_v36 = vsel %vm694_vm11, %v693_v21, 0  ;;  %v610_v0 = vshrl.u32 %v605_v57, 16 }
  0xff   :  { %v496_v13 = vsel %vm375_vm0, %v495_v33, %v494_v20  ;;  %v619_v12 = vadd.s32 %v618_v51, %v608_v7  ;;  %v697_v45 = vand.u32 31, %v695_v36  ;;  %v588_v3 = vshrl.u32 %v583_v27, 16 }
 0x100   :  { %v499_v11 = vsel %vm1807_vm6, %v1447_v34, %v496_v13  ;;  %v597_v52 = vadd.s32 %v596_v26, %v586_v61  ;;  %v691_v22 = vor.u32 8388608, %v1777_v28  ;;  %v517_v46 = vadd.s32 3, %v500_v30 }
 0x101   :  { %v501_v31 = vmul.f32 %v499_v11, %v499_v11  ;;  %v620_v48 = vadd.s32 %v619_v12, %v610_v0  ;;  %v621_v47 = vmul.u32 %v1742_v32, %v567_v63  ;;  %v1847_v55 = vsub.s32 32, %v697_v45 }
 0x102   :  { %v1849_v10 = vadd.s32 %v597_v52, %v588_v3  ;;  %v1851_v59 = vadd.s32 %v613_v49, %v609_v24  ;;  %v1853_v14 = vshrl.u32 %v695_v36, 5  ;;  %v700_v25 = vshll.u32 %v1391_v56, %v697_v45 }
 0x103   :  { %v502_v35 = vmul.f32 -0.001358992, %v501_v31  ;;  %v509_v15 = vmul.f32 -0.00019511016, %v501_v31  ;;  %v624_v57 = vadd.s32 1, %v620_v48  ;;  %v701_v28 = vshrl.u32 %v1392_v58, %v1847_v55 }
 0x104   :  { %vm623_vm12 = vc.u32 %v1849_v10, %v1851_v59  ;;  %v704_v32 = vshrl.u32 %v1393_v62, %v1847_v55  ;;  %v703_v24 = vshll.u32 %v1392_v58, %v697_v45  ;;  %v706_v4 = vshll.u32 %v1393_v62, %v697_v45 }
 0x105   :  { %v503_v23 = vadd.f32 0.041655596, %v502_v35  ;;  %v510_v6 = vadd.f32 0.008332121, %v509_v15  ;;  %v625_v27 = vsel %vm623_vm12, %v624_v57, %v620_v48  ;;  %v707_v9 = vshrl.u32 %v1394_v2, %v1847_v55 }
 0x106   :  { %v626_v16 = vadd.s32 %v625_v27, %v621_v47  ;;  %v1866_v29 = vor.u32 %v701_v28, %v700_v25  ;;  %v709_v49 = vshll.u32 %v1394_v2, %v697_v45  ;;  %v710_v60 = vshrl.u32 %v1395_v5, %v1847_v55 }
 0x107   :  { %v504_v44 = vmul.f32 %v503_v23, %v501_v31  ;;  %v511_v42 = vmul.f32 %v510_v6, %v501_v31  ;;  %v712_v20 = vshll.u32 %v1395_v5, %v697_v45  ;;  %v713_v43 = vshrl.u32 %v1396_v8, %v1847_v55 }
 0x108   :  { %v627_v63 = vadd.s32 536870912, %v626_v16  ;;  %v1874_v54 = vor.u32 %v704_v32, %v703_v24  ;;  %v518_v33 = vand.u32 3, %v517_v46  ;;  %v708_v17 = vor.u32 %v707_v9, %v706_v4 }
 0x109   :  { %v505_v21 = vadd.f32 -0.4999988, %v504_v44  ;;  %v512_v30 = vadd.f32 -0.16666654, %v511_v42  ;;  %v711_v19 = vor.u32 %v710_v60, %v709_v49  ;;  %v714_v53 = vor.u32 %v713_v43, %v712_v20 }
 0x10a   :  { %v1876_v13 = vshrl.u32 %v627_v63, 30  ;;  %vm718_vm13 = vcmp.lt.s32.totalorder %v1853_v14, 4  ;;  %vm715_vm14 = vcmp.lt.s32.totalorder %v1853_v14, 1  ;;  %vm717_vm15 = vcmp.lt.s32.totalorder %v1853_v14, 3 }
 0x10b   :  { %v506_v7 = vmul.f32 %v505_v21, %v501_v31  ;;  %v513_v51 = vmul.f32 %v512_v30, %v501_v31  ;;  %v724_v61 = vsel %vm718_vm13, %v711_v19, 920167782  ;;  %v1883_v26 = vshll.u32 %v691_v22, 8 }
 0x10c   :  { %v629_v12 = vshll.u32 %v1876_v13, 30  ;;  %v723_v45 = vsel %vm715_vm14, %v1866_v29, %v1874_v54  ;;  %vm519_vm0 = vcmp.lt.s32.totalorder %v518_v33, 2  ;;  %vm716_vm1 = vcmp.lt.s32.totalorder %v1853_v14, 2 }
 0x10d   :  { %v507_v36 = vadd.f32 1.0, %v506_v7  ;;  %v514_v0 = vadd.f32 1.0, %v513_v51  ;;  %v725_v31 = vsel %vm717_vm15, %v708_v17, %v724_v61  ;;  %v728_v3 = vsel %vm718_vm13, %v714_v53, 1326507024 }
 0x10e   :  { %v630_v46 = vsub.s32 %v626_v16, %v629_v12  ;;  %v727_v48 = vsel %vm715_vm14, %v1874_v54, %v708_v17  ;;  %vm520_vm2 = vcmp.eq.s32.totalorder %v518_v33, 0  ;;  %vm523_vm3 = vcmp.eq.s32.totalorder %v518_v33, 2 }
 0x10f   :  { %v515_v52 = vmul.f32 %v514_v0, %v499_v11  ;;  %v524_v22 = vxor.u32 2147483648, %v507_v36  ;;  %v726_v47 = vsel %vm716_vm1, %v723_v45, %v725_v31  ;;  %v729_v35 = vsel %vm717_vm15, %v711_v19, %v728_v3 }
 0x110   :  { %vm631_vm4 = vcmp.lt.s32.totalorder %v630_v46, 0  ;;  %v632_v57 = vsub.s32 0, %v630_v46  ;;  %v732_v25 = vand.u32 65535, %v1883_v26  ;;  %v730_v28 = vsel %vm716_vm1, %v727_v48, %v729_v35 }
 0x111   :  { %v521_v15 = vxor.u32 2147483648, %v515_v52  ;;  %v525_v11 = vsel %vm523_vm3, %v524_v22, %v515_v52  ;;  %v733_v23 = vshrl.u32 %v1883_v26, 16  ;;  %v756_v6 = vand.u32 65535, %v726_v47 }
 0x112   :  { %v633_v27 = vsel %vm631_vm4, %v632_v57, %v630_v46  ;;  %v734_v24 = vand.u32 65535, %v730_v28  ;;  %v735_v4 = vshrl.u32 %v730_v28, 16  ;;  %vm516_vm5 = vweird.f32 %v1447_v34 }
 0x113   :  { %v522_v32 = vsel %vm520_vm2, %v507_v36, %v521_v15  ;;  %v634_v44 = vclz %v633_v27  ;;  %v757_v42 = vshrl.u32 %v726_v47, 16  ;;  %v622_v20 = vadd.s32 %v1851_v59, %v1849_v10 }
 0x114   :  { %v526_v9 = vsel %vm519_vm0, %v522_v32, %v525_v11  ;;  %v737_v49 = vmul.u32 %v735_v4, %v732_v25  ;;  %v738_v60 = vmul.u32 %v734_v24, %v733_v23  ;;  %v699_v21 = vshrl.u32 %v1391_v56, %v1847_v55 }
 0x115   :  { %v527_v16 = vsel %vm516_vm5, nan, %v526_v9  ;;  %v1339_v43 = vadd.s32 4294967294, %v634_v44  ;;  %v720_v30 = vsel %vm718_vm13, %v708_v17, 2102212464  ;;  %v736_v63 = vmul.u32 %v734_v24, %v732_v25 }
 0x116   :  { %1305 = vst [vmem:[#allocation2 + $0x10] sm:$0xff] %v527_v16  ;;  %v740_v34 = vshll.u32 %v737_v49, 16  ;;  %v758_v33 = vmul.u32 %v756_v6, %v732_v25  ;;  %v739_v19 = vmul.u32 %v735_v4, %v733_v23  ;;  %v742_v53 = vshll.u32 %v738_v60, 16 }
 0x117   :  { %vm1340_vm6 = vcmp.lt.s32.totalorder %v1339_v43, 0  ;;  %v759_v7 = vmul.u32 %v757_v42, %v732_v25  ;;  %vm530_vm7 = vcmp.lt.s32.totalorder %v1437_v18, 0  ;;  %v760_v59 = vmul.u32 %v756_v6, %v733_v23 }
 0x118   :  { %v637_v51 = vsel %vm1340_vm6, 0, %v1339_v43  ;;  %vm744_vm8 = vc.u32 %v736_v63, %v740_v34  ;;  %v746_v10 = vadd.s32 %v740_v34, %v736_v63  ;;  %v741_v55 = vshrl.u32 %v737_v49, 16 }
 0x119   :  { %v638_v61 = vsub.s32 32, %v637_v51  ;;  %v642_v36 = vsub.s32 4294967266, %v637_v51  ;;  %v745_v0 = vsel %vm744_vm8, 1, %v1390_v1  ;;  %v761_v17 = vmul.u32 %v757_v42, %v733_v23 }
 0x11a   :  { %v747_v12 = vadd.s32 %v745_v0, %v739_v19  ;;  %vm748_vm9 = vc.u32 %v746_v10, %v742_v53  ;;  %v762_v45 = vshll.u32 %v759_v7, 16  ;;  %v639_v31 = vshll.u32 %v630_v46, %v637_v51 }
 0x11b   :  { %v640_v3 = vshrl.u32 %v622_v20, %v638_v61  ;;  %v643_v52 = vadd.s32 127, %v642_v36  ;;  %v749_v22 = vsel %vm748_vm9, 1, %v1390_v1  ;;  %v764_v47 = vshll.u32 %v760_v59, 16 }
 0x11c   :  { %v751_v48 = vadd.s32 %v749_v22, %v747_v12  ;;  %vm766_vm10 = vc.u32 %v758_v33, %v762_v45  ;;  %v768_v35 = vadd.s32 %v762_v45, %v758_v33  ;;  %v652_v25 = vsub.s32 4, %v1876_v13 }
 0x11d   :  { %v641_v15 = vor.u32 %v640_v3, %v639_v31  ;;  %v644_v57 = vshll.u32 %v643_v52, 23  ;;  %v767_v11 = vsel %vm766_vm10, 1, %v1390_v1  ;;  %v838_v23 = vand.u32 2147483647, %v1451_v39 }
 0x11e   :  { %v752_v28 = vadd.s32 %v751_v48, %v741_v55  ;;  %v769_v6 = vadd.s32 %v767_v11, %v761_v17  ;;  %vm770_vm11 = vc.u32 %v768_v35, %v764_v47  ;;  %v719_v32 = vsel %vm715_vm14, %v699_v21, %v1866_v29 }
 0x11f   :  { %v645_v46 = vor.u32 4788187, %v644_v57  ;;  %v743_v27 = vshrl.u32 %v738_v60, 16  ;;  %v771_v24 = vsel %vm770_vm11, 1, %v1390_v1  ;;  %v721_v4 = vsel %vm717_vm15, %v1874_v54, %v720_v30 }
 0x120   :  { %v763_v9 = vshrl.u32 %v759_v7, 16  ;;  %v773_v44 = vadd.s32 %v771_v24, %v769_v6  ;;  %v841_v42 = vand.u32 2139095040, %v1451_v39  ;;  %v648_v49 = vcvt.s32.f32 %v641_v15 }
 0x121   :  { %v646_v16 = vand.u32 2147483647, %v645_v46  ;;  %v653_v20 = vsel %vm530_vm7, %v652_v25, %v1876_v13  ;;  %v753_v43 = vadd.s32 %v752_v28, %v743_v27  ;;  %v765_v63 = vshrl.u32 %v760_v59, 16 }
 0x122   :  { %v774_v29 = vadd.s32 %v773_v44, %v763_v9  ;;  %v842_v60 = vshrl.u32 %v841_v42, 23  ;;  %v845_v21 = vand.u32 8388607, %v838_v23  ;;  %v772_v33 = vadd.s32 %v768_v35, %v764_v47 }
 0x123   :  { %v649_v34 = vmul.f32 %v648_v49, %v646_v16  ;;  %vm1935_vm12 = vcmp.le.f32.partialorder %v528_v50, 0.7853982  ;;  %v722_v30 = vsel %vm716_vm1, %v719_v32, %v721_v4  ;;  %v996_v61 = vand.u32 2139095040, %v1453_v40 }
 0x124   :  { %v775_v19 = vadd.s32 %v774_v29, %v765_v63  ;;  %v1344_v13 = vadd.s32 4294967169, %v842_v60  ;;  %v655_v7 = vsel %vm1935_vm12, 0, %v653_v20  ;;  %vm778_vm13 = vc.u32 %v753_v43, %v772_v33 }
 0x125   :  { %v650_v53 = vxor.u32 2147483648, %v649_v34  ;;  %v846_v10 = vor.u32 8388608, %v845_v21  ;;  %v776_v36 = vmul.u32 %v1883_v26, %v722_v30  ;;  %v672_v12 = vadd.s32 3, %v655_v7 }
 0x126   :  { %v779_v51 = vadd.s32 1, %v775_v19  ;;  %v848_v59 = vadd.s32 1, %v1344_v13  ;;  %v997_v52 = vshrl.u32 %v996_v61, 23  ;;  %v1956_v11 = vadd.s32 %v772_v33, %v753_v43 }
 0x127   :  { %v651_v50 = vsel %vm530_vm7, %v650_v53, %v649_v34  ;;  %v1950_v3 = vshll.u32 %v846_v10, 8  ;;  %v1954_v57 = vand.u32 3, %v672_v12  ;;  %v993_v6 = vand.u32 2147483647, %v1453_v40 }
 0x128   :  { %v654_v14 = vsel %vm1935_vm12, %v1437_v18, %v651_v50  ;;  %v780_v55 = vsel %vm778_vm13, %v779_v51, %v775_v19  ;;  %vm849_vm14 = vcmp.gt.s32.totalorder %v848_v59, 0  ;;  %v1347_v46 = vadd.s32 4294967169, %v997_v52 }
 0x129   :  { %v656_v0 = vmul.f32 %v654_v14, %v654_v14  ;;  %v781_v17 = vadd.s32 %v780_v55, %v776_v36  ;;  %v850_v45 = vsel %vm849_vm14, %v848_v59, 0  ;;  %v1959_v28 = vand.u32 65535, %v1950_v3 }
 0x12a   :  { %v852_v31 = vand.u32 31, %v850_v45  ;;  %vm685_vm15 = vcmp.lt.s32.totalorder %v1449_v38, 0  ;;  %v1963_v4 = vshrl.u32 %v850_v45, 5  ;;  %vm678_vm0 = vcmp.eq.s32.totalorder %v1954_v57, 2 }
 0x12b   :  { %v657_v22 = vmul.f32 -0.001358992, %v656_v0  ;;  %v664_v48 = vmul.f32 -0.00019511016, %v656_v0  ;;  %v782_v47 = vadd.s32 536870912, %v781_v17  ;;  %vm675_vm1 = vcmp.eq.s32.totalorder %v1954_v57, 0 }
 0x12c   :  { %v1952_v35 = vsub.s32 32, %v852_v31  ;;  %v855_v9 = vshll.u32 %v1391_v56, %v852_v31  ;;  %v858_v63 = vshll.u32 %v1392_v58, %v852_v31  ;;  %v861_v29 = vshll.u32 %v1393_v62, %v852_v31 }
 0x12d   :  { %v658_v26 = vadd.f32 0.041655596, %v657_v22  ;;  %v665_v15 = vadd.f32 0.008332121, %v664_v48  ;;  %v783_v25 = vshrl.u32 %v782_v47, 30  ;;  %v864_v21 = vshll.u32 %v1394_v2, %v852_v31 }
 0x12e   :  { %v856_v44 = vshrl.u32 %v1392_v58, %v1952_v35  ;;  %v859_v42 = vshrl.u32 %v1393_v62, %v1952_v35  ;;  %v865_v16 = vshrl.u32 %v1395_v5, %v1952_v35  ;;  %v862_v60 = vshrl.u32 %v1394_v2, %v1952_v35 }
 0x12f   :  { %v659_v32 = vmul.f32 %v658_v26, %v656_v0  ;;  %v666_v27 = vmul.f32 %v665_v15, %v656_v0  ;;  %v784_v24 = vshll.u32 %v783_v25, 30  ;;  %v868_v34 = vshrl.u32 %v1396_v8, %v1952_v35 }
 0x130   :  { %vm674_vm2 = vcmp.lt.s32.totalorder %v1954_v57, 2  ;;  %vm671_vm4 = vweird.f32 %v1437_v18  ;;  %v807_v19 = vsub.s32 4, %v783_v25  ;;  %v857_v13 = vor.u32 %v856_v44, %v855_v9 }
 0x131   :  { %v660_v49 = vadd.f32 -0.4999988, %v659_v32  ;;  %v667_v20 = vadd.f32 -0.16666654, %v666_v27  ;;  %v1973_v43 = vsub.s32 %v781_v17, %v784_v24  ;;  %v860_v53 = vor.u32 %v859_v42, %v858_v63 }
 0x132   :  { %v866_v7 = vor.u32 %v865_v16, %v864_v21  ;;  %v867_v61 = vshll.u32 %v1395_v5, %v852_v31  ;;  %v863_v36 = vor.u32 %v862_v60, %v861_v29  ;;  %v888_v55 = vshrl.u32 %v1950_v3, 16 }
 0x133   :  { %v661_v33 = vmul.f32 %v660_v49, %v656_v0  ;;  %v668_v54 = vmul.f32 %v667_v20, %v656_v0  ;;  %vm786_vm3 = vcmp.lt.s32.totalorder %v1973_v43, 0  ;;  %v787_v30 = vsub.s32 0, %v1973_v43 }
 0x134   :  { %v1990_v0 = vadd.s32 1, %v1347_v46  ;;  %vm1994_vm5 = vcmp.le.f32.partialorder %v683_v37, 0.7853982  ;;  %v869_v52 = vor.u32 %v868_v34, %v867_v61  ;;  %vm870_vm6 = vcmp.lt.s32.totalorder %v1963_v4, 1 }
 0x135   :  { %v662_v51 = vadd.f32 1.0, %v661_v33  ;;  %v669_v10 = vadd.f32 1.0, %v668_v54  ;;  %v788_v59 = vsel %vm786_vm3, %v787_v30, %v1973_v43  ;;  %v2001_v31 = vsel %vm685_vm15, %v807_v19, %v783_v25 }
 0x136   :  { %v789_v50 = vclz %v788_v59  ;;  %vm873_vm7 = vcmp.lt.s32.totalorder %v1963_v4, 4  ;;  %vm871_vm8 = vcmp.lt.s32.totalorder %v1963_v4, 2  ;;  %vm872_vm9 = vcmp.lt.s32.totalorder %v1963_v4, 3 }
 0x137   :  { %v670_v12 = vmul.f32 %v669_v10, %v654_v14  ;;  %v679_v17 = vxor.u32 2147483648, %v662_v51  ;;  %v878_v14 = vsel %vm870_vm6, %v857_v13, %v860_v53  ;;  %v879_v37 = vsel %vm873_vm7, %v866_v7, 920167782 }
 0x138   :  { %v1342_v22 = vadd.s32 4294967294, %v789_v50  ;;  %v880_v26 = vsel %vm872_vm9, %v863_v36, %v879_v37  ;;  %v882_v15 = vsel %vm870_vm6, %v860_v53, %v863_v36  ;;  %v883_v27 = vsel %vm873_vm7, %v869_v52, 1326507024 }
 0x139   :  { %v676_v48 = vxor.u32 2147483648, %v670_v12  ;;  %v680_v47 = vsel %vm678_vm0, %v679_v17, %v670_v12  ;;  %v881_v32 = vsel %vm871_vm8, %v878_v14, %v880_v26  ;;  %v875_v42 = vsel %vm873_vm7, %v863_v36, 2102212464 }
 0x13a   :  { %vm1343_vm10 = vcmp.lt.s32.totalorder %v1342_v22, 0  ;;  %v884_v49 = vsel %vm872_vm9, %v866_v7, %v883_v27  ;;  %v911_v20 = vand.u32 65535, %v881_v32  ;;  %v912_v63 = vshrl.u32 %v881_v32, 16 }
 0x13b   :  { %v677_v25 = vsel %vm675_vm1, %v662_v51, %v676_v48  ;;  %v792_v46 = vsel %vm1343_vm10, 0, %v1342_v22  ;;  %v885_v57 = vsel %vm871_vm8, %v882_v15, %v884_v49  ;;  %v854_v34 = vshrl.u32 %v1391_v56, %v1952_v35 }
 0x13c   :  { %v681_v24 = vsel %vm674_vm2, %v677_v25, %v680_v47  ;;  %v793_v9 = vsub.s32 32, %v792_v46  ;;  %v797_v44 = vsub.s32 4294967266, %v792_v46  ;;  %v794_v29 = vshll.u32 %v1973_v43, %v792_v46 }
 0x13d   :  { %v682_v16 = vsel %vm671_vm4, nan, %v681_v24  ;;  %v889_v33 = vand.u32 65535, %v885_v57  ;;  %v890_v18 = vshrl.u32 %v885_v57, 16  ;;  %v914_v54 = vmul.u32 %v912_v63, %v1959_v28 }
 0x13e   :  { %v795_v60 = vshrl.u32 %v1956_v11, %v793_v9  ;;  %v798_v21 = vadd.s32 127, %v797_v44  ;;  %1306 = vst [vmem:[#allocation2 + $0x18] sm:$0xff] %v682_v16  ;;  %v810_v43 = vsel %vm1994_vm5, 0, %v2001_v31  ;;  %v915_v7 = vmul.u32 %v911_v20, %v888_v55 }
 0x13f   :  { %v874_v11 = vsel %vm870_vm6, %v854_v34, %v857_v13  ;;  %v876_v51 = vsel %vm872_vm9, %v860_v53, %v875_v42  ;;  %v892_v10 = vmul.u32 %v890_v18, %v1959_v28  ;;  %v893_v35 = vmul.u32 %v889_v33, %v888_v55 }
 0x140   :  { %v796_v30 = vor.u32 %v795_v60, %v794_v29  ;;  %v799_v19 = vshll.u32 %v798_v21, 23  ;;  %v913_v61 = vmul.u32 %v911_v20, %v1959_v28  ;;  %v916_v50 = vmul.u32 %v912_v63, %v888_v55 }
 0x141   :  { %v917_v36 = vshll.u32 %v914_v54, 16  ;;  %v891_v17 = vmul.u32 %v889_v33, %v1959_v28  ;;  %v894_v52 = vmul.u32 %v890_v18, %v888_v55  ;;  %v895_v22 = vshll.u32 %v892_v10, 16 }
 0x142   :  { %v800_v59 = vor.u32 4788187, %v799_v19  ;;  %v803_v12 = vcvt.s32.f32 %v796_v30  ;;  %v897_v14 = vshll.u32 %v893_v35, 16  ;;  %v919_v48 = vshll.u32 %v915_v7, 16 }
 0x143   :  { %vm921_vm11 = vc.u32 %v913_v61, %v917_v36  ;;  %vm899_vm12 = vc.u32 %v891_v17, %v895_v22  ;;  %v901_v13 = vadd.s32 %v895_v22, %v891_v17  ;;  %v923_v37 = vadd.s32 %v917_v36, %v913_v61 }
 0x144   :  { %v801_v31 = vand.u32 2147483647, %v800_v59  ;;  %v922_v53 = vsel %vm921_vm11, 1, %v1390_v1  ;;  %v900_v26 = vsel %vm899_vm12, 1, %v1390_v1  ;;  %vm1004_vm13 = vcmp.gt.s32.totalorder %v1990_v0, 0 }
 0x145   :  { %v924_v15 = vadd.s32 %v922_v53, %v916_v50  ;;  %v902_v25 = vadd.s32 %v900_v26, %v894_v52  ;;  %vm903_vm14 = vc.u32 %v901_v13, %v897_v14  ;;  %v918_v28 = vshrl.u32 %v914_v54, 16 }
 0x146   :  { %v804_v47 = vmul.f32 %v803_v12, %v801_v31  ;;  %vm925_vm0 = vc.u32 %v923_v37, %v919_v48  ;;  %v904_v46 = vsel %vm903_vm14, 1, %v1390_v1  ;;  %v1005_v27 = vsel %vm1004_vm13, %v1990_v0, 0 }
 0x147   :  { %v926_v32 = vsel %vm925_vm0, 1, %v1390_v1  ;;  %v896_v24 = vshrl.u32 %v892_v10, 16  ;;  %v906_v9 = vadd.s32 %v904_v46, %v902_v25  ;;  %v1007_v42 = vand.u32 31, %v1005_v27 }
 0x148   :  { %v805_v55 = vxor.u32 2147483648, %v804_v47  ;;  %v928_v44 = vadd.s32 %v926_v32, %v924_v15  ;;  %v877_v49 = vsel %vm871_vm8, %v874_v11, %v876_v51  ;;  %v898_v20 = vshrl.u32 %v893_v35, 16 }
 0x149   :  { %v920_v63 = vshrl.u32 %v915_v7, 16  ;;  %v907_v60 = vadd.s32 %v906_v9, %v896_v24  ;;  %v2060_v57 = vsub.s32 32, %v1007_v42  ;;  %v827_v34 = vadd.s32 3, %v810_v43 }
 0x14a   :  { %v806_v16 = vsel %vm685_vm15, %v805_v55, %v804_v47  ;;  %v929_v21 = vadd.s32 %v928_v44, %v918_v28  ;;  %v1000_v33 = vand.u32 8388607, %v993_v6  ;;  %v2066_v54 = vadd.s32 %v923_v37, %v919_v48 }
 0x14b   :  { %v809_v29 = vsel %vm1994_vm5, %v1449_v38, %v806_v16  ;;  %v2064_v18 = vadd.s32 %v907_v60, %v898_v20  ;;  %v931_v30 = vmul.u32 %v1950_v3, %v877_v49  ;;  %v2069_v45 = vshrl.u32 %v1005_v27, 5 }
 0x14c   :  { %v811_v0 = vmul.f32 %v809_v29, %v809_v29  ;;  %v930_v4 = vadd.s32 %v929_v21, %v920_v63  ;;  %v1013_v11 = vshll.u32 %v1392_v58, %v1007_v42  ;;  %v1014_v51 = vshrl.u32 %v1393_v62, %v2060_v57 }
 0x14d   :  { %vm933_vm15 = vc.u32 %v2064_v18, %v2066_v54  ;;  %v1017_v10 = vshrl.u32 %v1394_v2, %v2060_v57  ;;  %v1011_v3 = vshrl.u32 %v1392_v58, %v2060_v57  ;;  %v1016_v61 = vshll.u32 %v1393_v62, %v1007_v42 }
 0x14e   :  { %v812_v19 = vmul.f32 -0.001358992, %v811_v0  ;;  %v819_v7 = vmul.f32 -0.00019511016, %v811_v0  ;;  %v934_v43 = vadd.s32 1, %v930_v4  ;;  %v1019_v36 = vshll.u32 %v1394_v2, %v1007_v42 }
 0x14f   :  { %v1020_v12 = vshrl.u32 %v1395_v5, %v2060_v57  ;;  %v1022_v17 = vshll.u32 %v1395_v5, %v1007_v42  ;;  %v1023_v14 = vshrl.u32 %v1396_v8, %v2060_v57  ;;  %v1010_v48 = vshll.u32 %v1391_v56, %v1007_v42 }
 0x150   :  { %v813_v35 = vadd.f32 0.041655596, %v812_v19  ;;  %v820_v59 = vadd.f32 0.008332121, %v819_v7  ;;  %v935_v50 = vsel %vm933_vm15, %v934_v43, %v930_v4  ;;  %v2088_v13 = vor.u32 %v1014_v51, %v1013_v11 }
 0x151   :  { %v936_v31 = vadd.s32 %v935_v50, %v931_v30  ;;  %v2090_v53 = vor.u32 %v1017_v10, %v1016_v61  ;;  %v1021_v37 = vor.u32 %v1020_v12, %v1019_v36  ;;  %v1024_v25 = vor.u32 %v1023_v14, %v1022_v17 }
 0x152   :  { %v814_v52 = vmul.f32 %v813_v35, %v811_v0  ;;  %v821_v22 = vmul.f32 %v820_v59, %v811_v0  ;;  %v828_v28 = vand.u32 3, %v827_v34  ;;  %v1001_v55 = vor.u32 8388608, %v1000_v33 }
 0x153   :  { %v937_v15 = vadd.s32 536870912, %v936_v31  ;;  %v2092_v46 = vor.u32 %v1011_v3, %v1010_v48  ;;  %vm1028_vm1 = vcmp.lt.s32.totalorder %v2069_v45, 4  ;;  %vm1025_vm2 = vcmp.lt.s32.totalorder %v2069_v45, 1 }
 0x154   :  { %v815_v47 = vadd.f32 -0.4999988, %v814_v52  ;;  %v822_v26 = vadd.f32 -0.16666654, %v821_v22  ;;  %vm1027_vm3 = vcmp.lt.s32.totalorder %v2069_v45, 3  ;;  %v1037_v20 = vsel %vm1025_vm2, %v2088_v13, %v2090_v53 }
 0x155   :  { %v2094_v24 = vshrl.u32 %v937_v15, 30  ;;  %v1034_v9 = vsel %vm1028_vm1, %v1021_v37, 920167782  ;;  %v1038_v44 = vsel %vm1028_vm1, %v1024_v25, 1326507024  ;;  %v1033_v63 = vsel %vm1025_vm2, %v2092_v46, %v2088_v13 }
 0x156   :  { %v816_v32 = vmul.f32 %v815_v47, %v811_v0  ;;  %v823_v27 = vmul.f32 %v822_v26, %v811_v0  ;;  %v1035_v60 = vsel %vm1027_vm3, %v2090_v53, %v1034_v9  ;;  %v1039_v21 = vsel %vm1027_vm3, %v1021_v37, %v1038_v44 }
 0x157   :  { %v939_v49 = vshll.u32 %v2094_v24, 30  ;;  %v2117_v0 = vshll.u32 %v1001_v55, 8  ;;  %vm1026_vm4 = vcmp.lt.s32.totalorder %v2069_v45, 2  ;;  %vm829_vm5 = vcmp.lt.s32.totalorder %v828_v28, 2 }
 0x158   :  { %v817_v42 = vadd.f32 1.0, %v816_v32  ;;  %v824_v16 = vadd.f32 1.0, %v823_v27  ;;  %vm830_vm6 = vcmp.eq.s32.totalorder %v828_v28, 0  ;;  %v1040_v30 = vsel %vm1026_vm4, %v1037_v20, %v1039_v21 }
 0x159   :  { %v940_v4 = vsub.s32 %v936_v31, %v939_v49  ;;  %v1036_v11 = vsel %vm1026_vm4, %v1033_v63, %v1035_v60  ;;  %vm833_vm8 = vcmp.eq.s32.totalorder %v828_v28, 2  ;;  %v1042_v43 = vand.u32 65535, %v2117_v0 }
 0x15a   :  { %v825_v34 = vmul.f32 %v824_v16, %v809_v29  ;;  %v834_v33 = vxor.u32 2147483648, %v817_v42  ;;  %v1044_v51 = vand.u32 65535, %v1040_v30  ;;  %v1045_v29 = vshrl.u32 %v1040_v30, 16 }
 0x15b   :  { %vm941_vm7 = vcmp.lt.s32.totalorder %v940_v4, 0  ;;  %v942_v7 = vsub.s32 0, %v940_v4  ;;  %v1043_v3 = vshrl.u32 %v2117_v0, 16  ;;  %vm826_vm9 = vweird.f32 %v1449_v38 }
 0x15c   :  { %v831_v19 = vxor.u32 2147483648, %v825_v34  ;;  %v835_v35 = vsel %vm833_vm8, %v834_v33, %v825_v34  ;;  %v1067_v36 = vshrl.u32 %v1036_v11, 16  ;;  %v1047_v17 = vmul.u32 %v1045_v29, %v1042_v43 }
 0x15d   :  { %v943_v59 = vsel %vm941_vm7, %v942_v7, %v940_v4  ;;  %v1048_v52 = vmul.u32 %v1044_v51, %v1043_v3  ;;  %v1066_v22 = vand.u32 65535, %v1036_v11  ;;  %v1009_v14 = vshrl.u32 %v1391_v56, %v2060_v57 }
 0x15e   :  { %v832_v10 = vsel %vm830_vm6, %v817_v42, %v831_v19  ;;  %v944_v50 = vclz %v943_v59  ;;  %v932_v48 = vadd.s32 %v2066_v54, %v2064_v18  ;;  %v1046_v37 = vmul.u32 %v1044_v51, %v1042_v43 }
 0x15f   :  { %v836_v61 = vsel %vm829_vm5, %v832_v10, %v835_v35  ;;  %v1049_v47 = vmul.u32 %v1045_v29, %v1043_v3  ;;  %v1050_v26 = vshll.u32 %v1047_v17, 16  ;;  %v1051_v38 = vshrl.u32 %v1047_v17, 16 }
 0x160   :  { %v837_v12 = vsel %vm826_vm9, nan, %v836_v61  ;;  %v1345_v31 = vadd.s32 4294967294, %v944_v50  ;;  %v1052_v15 = vshll.u32 %v1048_v52, 16  ;;  %v1069_v25 = vmul.u32 %v1067_v36, %v1042_v43 }
 0x161   :  { %1307 = vst [vmem:[#allocation2 + $0x20] sm:$0xff] %v837_v12  ;;  %vm1054_vm11 = vc.u32 %v1046_v37, %v1050_v26  ;;  %v1056_v55 = vadd.s32 %v1050_v26, %v1046_v37  ;;  %v1070_v32 = vmul.u32 %v1066_v22, %v1043_v3  ;;  %vm840_vm12 = vcmp.lt.s32.totalorder %v1451_v39, 0 }
 0x162   :  { %vm1346_vm10 = vcmp.lt.s32.totalorder %v1345_v31, 0  ;;  %v1055_v57 = vsel %vm1054_vm11, 1, %v1390_v1  ;;  %v1068_v44 = vmul.u32 %v1066_v22, %v1042_v43  ;;  %v1071_v18 = vmul.u32 %v1067_v36, %v1043_v3 }
 0x163   :  { %v947_v28 = vsel %vm1346_vm10, 0, %v1345_v31  ;;  %v1057_v42 = vadd.s32 %v1055_v57, %v1049_v47  ;;  %vm1058_vm13 = vc.u32 %v1056_v55, %v1052_v15  ;;  %v1072_v54 = vshll.u32 %v1069_v25, 16 }
 0x164   :  { %v948_v27 = vsub.s32 32, %v947_v28  ;;  %v952_v9 = vsub.s32 4294967266, %v947_v28  ;;  %v949_v16 = vshll.u32 %v940_v4, %v947_v28  ;;  %v1059_v63 = vsel %vm1058_vm13, 1, %v1390_v1 }
 0x165   :  { %v1061_v60 = vadd.s32 %v1059_v63, %v1057_v42  ;;  %v1074_v21 = vshll.u32 %v1070_v32, 16  ;;  %vm1076_vm14 = vc.u32 %v1068_v44, %v1072_v54  ;;  %v1078_v34 = vadd.s32 %v1072_v54, %v1068_v44 }
 0x166   :  { %v950_v49 = vshrl.u32 %v932_v48, %v948_v27  ;;  %v953_v20 = vadd.s32 127, %v952_v9  ;;  %v1030_v19 = vsel %vm1028_vm1, %v2090_v53, 2102212464  ;;  %v1077_v7 = vsel %vm1076_vm14, 1, %v1390_v1 }
 0x167   :  { %v962_v11 = vsub.s32 4, %v2094_v24  ;;  %v1062_v43 = vadd.s32 %v1061_v60, %v1051_v38  ;;  %v1079_v4 = vadd.s32 %v1077_v7, %v1071_v18  ;;  %vm1080_vm0 = vc.u32 %v1078_v34, %v1074_v21 }
 0x168   :  { %v951_v33 = vor.u32 %v950_v49, %v949_v16  ;;  %v954_v30 = vshll.u32 %v953_v20, 23  ;;  %v1053_v29 = vshrl.u32 %v1048_v52, 16  ;;  %v1081_v10 = vsel %vm1080_vm0, 1, %v1390_v1 }
 0x169   :  { %v1151_v35 = vand.u32 2139095040, %v1455_v41  ;;  %v1029_v59 = vsel %vm1025_vm2, %v1009_v14, %v2092_v46  ;;  %v1031_v53 = vsel %vm1027_vm3, %v2088_v13, %v1030_v19  ;;  %v1073_v3 = vshrl.u32 %v1069_v25, 16 }
 0x16a   :  { %v955_v51 = vor.u32 4788187, %v954_v30  ;;  %v1083_v61 = vadd.s32 %v1081_v10, %v1079_v4  ;;  %v958_v36 = vcvt.s32.f32 %v951_v33  ;;  %v2148_v12 = vadd.s32 %v1062_v43, %v1053_v29 }
 0x16b   :  { %v1152_v17 = vshrl.u32 %v1151_v35, 23  ;;  %v963_v52 = vsel %vm840_vm12, %v962_v11, %v2094_v24  ;;  %v1075_v22 = vshrl.u32 %v1070_v32, 16  ;;  %v2153_v37 = vadd.s32 %v1078_v34, %v1074_v21 }
 0x16c   :  { %v956_v50 = vand.u32 2147483647, %v955_v51  ;;  %v1084_v31 = vadd.s32 %v1083_v61, %v1073_v3  ;;  %v1148_v46 = vand.u32 2147483647, %v1455_v41  ;;  %vm839_vm15 = vcmp.le.f32.partialorder %v838_v23, 0.7853982 }
 0x16d   :  { %v1350_v14 = vadd.s32 4294967169, %v1152_v17  ;;  %v1032_v13 = vsel %vm1026_vm4, %v1029_v59, %v1031_v53  ;;  %v965_v38 = vsel %vm839_vm15, 0, %v963_v52  ;;  %vm1088_vm1 = vc.u32 %v2148_v12, %v2153_v37 }
 0x16e   :  { %v959_v48 = vmul.f32 %v958_v36, %v956_v50  ;;  %v1085_v47 = vadd.s32 %v1084_v31, %v1075_v22  ;;  %v1086_v28 = vmul.u32 %v2117_v0, %v1032_v13  ;;  %v1155_v55 = vand.u32 8388607, %v1148_v46 }
 0x16f   :  { %v1158_v24 = vadd.s32 1, %v1350_v14  ;;  %v982_v45 = vadd.s32 3, %v965_v38  ;;  %vm981_vm7 = vweird.f32 %v1451_v39  ;;  %v1087_v14 = vadd.s32 %v2153_v37, %v2148_v12 }
 0x170   :  { %v960_v26 = vxor.u32 2147483648, %v959_v48  ;;  %v1089_v15 = vadd.s32 1, %v1085_v47  ;;  %v1156_v16 = vor.u32 8388608, %v1155_v55  ;;  %vm2243_vm13 = vcmp.le.f32.partialorder %v993_v6, 0.7853982 }
 0x171   :  { %vm1159_vm2 = vcmp.gt.s32.totalorder %v1158_v24, 0  ;;  %v2168_v49 = vand.u32 3, %v982_v45 }
 0x172   :  { %v961_v25 = vsel %vm840_vm12, %v960_v26, %v959_v48  ;;  %v1090_v32 = vsel %vm1088_vm1, %v1089_v15, %v1085_v47  ;;  %v1160_v27 = vsel %vm1159_vm2, %v1158_v24, 0  ;;  %v2175_v30 = vshll.u32 %v1156_v16, 8 }
 0x173   :  { %v964_v23 = vsel %vm839_vm15, %v1451_v39, %v961_v25  ;;  %v1091_v57 = vadd.s32 %v1090_v32, %v1086_v28  ;;  %v1162_v44 = vand.u32 31, %v1160_v27  ;;  %vm988_vm3 = vcmp.eq.s32.totalorder %v2168_v49, 2 }
 0x174   :  { %v966_v9 = vmul.f32 %v964_v23, %v964_v23  ;;  %v2178_v19 = vshrl.u32 %v1160_v27, 5  ;;  %vm985_vm4 = vcmp.eq.s32.totalorder %v2168_v49, 0  ;;  %vm984_vm5 = vcmp.lt.s32.totalorder %v2168_v49, 2 }
 0x175   :  { %v1092_v54 = vadd.s32 536870912, %v1091_v57  ;;  %v2170_v20 = vsub.s32 32, %v1162_v44  ;;  %v1165_v7 = vshll.u32 %v1391_v56, %v1162_v44  ;;  %v1168_v35 = vshll.u32 %v1392_v58, %v1162_v44 }
 0x176   :  { %v967_v42 = vmul.f32 -0.001358992, %v966_v9  ;;  %v974_v18 = vmul.f32 -0.00019511016, %v966_v9  ;;  %v1174_v53 = vshll.u32 %v1394_v2, %v1162_v44  ;;  %v1177_v22 = vshll.u32 %v1395_v5, %v1162_v44 }
 0x177   :  { %v2172_v60 = vshrl.u32 %v1092_v54, 30  ;;  %v1166_v11 = vshrl.u32 %v1392_v58, %v2170_v20  ;;  %v1169_v43 = vshrl.u32 %v1393_v62, %v2170_v20  ;;  %v1175_v10 = vshrl.u32 %v1395_v5, %v2170_v20 }
 0x178   :  { %v968_v0 = vadd.f32 0.041655596, %v967_v42  ;;  %v975_v63 = vadd.f32 0.008332121, %v974_v18  ;;  %v1172_v59 = vshrl.u32 %v1394_v2, %v2170_v20  ;;  %v1178_v3 = vshrl.u32 %v1396_v8, %v2170_v20 }
 0x179   :  { %v1094_v33 = vshll.u32 %v2172_v60, 30  ;;  %v2196_v17 = vor.u32 %v1166_v11, %v1165_v7  ;;  %v2198_v52 = vor.u32 %v1169_v43, %v1168_v35  ;;  %v1171_v58 = vshll.u32 %v1393_v62, %v1162_v44 }
 0x17a   :  { %v969_v21 = vmul.f32 %v968_v0, %v966_v9  ;;  %v976_v34 = vmul.f32 %v975_v63, %v966_v9  ;;  %v1176_v8 = vor.u32 %v1175_v10, %v1174_v53  ;;  %v1179_v26 = vor.u32 %v1178_v3, %v1177_v22 }
 0x17b   :  { %v1095_v29 = vsub.s32 %v1091_v57, %v1094_v33  ;;  %v2204_v47 = vor.u32 %v1172_v59, %v1171_v58  ;;  %vm1180_vm8 = vcmp.lt.s32.totalorder %v2178_v19, 1  ;;  %v1197_v15 = vand.u32 65535, %v2175_v30 }
 0x17c   :  { %v970_v4 = vadd.f32 -0.4999988, %v969_v21  ;;  %v977_v51 = vadd.f32 -0.16666654, %v976_v34  ;;  %vm1181_vm9 = vcmp.lt.s32.totalorder %v2178_v19, 2  ;;  %vm1183_vm10 = vcmp.lt.s32.totalorder %v2178_v19, 4 }
 0x17d   :  { %vm1096_vm6 = vcmp.lt.s32.totalorder %v1095_v29, 0  ;;  %v1097_v36 = vsub.s32 0, %v1095_v29  ;;  %v1188_v5 = vsel %vm1180_vm8, %v2196_v17, %v2198_v52  ;;  %vm1182_vm11 = vcmp.lt.s32.totalorder %v2178_v19, 3 }
 0x17e   :  { %v971_v61 = vmul.f32 %v970_v4, %v966_v9  ;;  %v978_v50 = vmul.f32 %v977_v51, %v966_v9  ;;  %v1189_v25 = vsel %vm1183_vm10, %v1176_v8, 920167782  ;;  %v1192_v55 = vsel %vm1180_vm8, %v2198_v52, %v2204_v47 }
 0x17f   :  { %v1098_v48 = vsel %vm1096_vm6, %v1097_v36, %v1095_v29  ;;  %v1190_v28 = vsel %vm1182_vm11, %v2204_v47, %v1189_v25  ;;  %v1198_v11 = vshrl.u32 %v2175_v30, 16  ;;  %vm995_vm2 = vcmp.lt.s32.totalorder %v1453_v40, 0 }
 0x180   :  { %v972_v2 = vadd.f32 1.0, %v971_v61  ;;  %v979_v31 = vadd.f32 1.0, %v978_v50  ;;  %v1099_v13 = vclz %v1098_v48  ;;  %v1191_v27 = vsel %vm1181_vm9, %v1188_v5, %v1190_v28 }
 0x181   :  { %v1221_v0 = vand.u32 65535, %v1191_v27  ;;  %v1222_v63 = vshrl.u32 %v1191_v27, 16 }
 0x182   :  { %v980_v38 = vmul.f32 %v979_v31, %v964_v23  ;;  %v989_v24 = vxor.u32 2147483648, %v972_v2  ;;  %v1348_v62 = vadd.s32 4294967294, %v1099_v13  ;;  %v1193_v23 = vsel %vm1183_vm10, %v1179_v26, 1326507024 }
 0x183   :  { %v1194_v9 = vsel %vm1182_vm11, %v1176_v8, %v1193_v23  ;;  %v1224_v49 = vmul.u32 %v1222_v63, %v1197_v15  ;;  %v1225_v10 = vmul.u32 %v1221_v0, %v1198_v11  ;;  %v1223_v61 = vmul.u32 %v1221_v0, %v1197_v15 }
 0x184   :  { %v986_v12 = vxor.u32 2147483648, %v980_v38  ;;  %v990_v37 = vsel %vm988_vm3, %v989_v24, %v980_v38  ;;  %vm1349_vm12 = vcmp.lt.s32.totalorder %v1348_v62, 0  ;;  %v1195_v16 = vsel %vm1181_vm9, %v1192_v55, %v1194_v9 }
 0x185   :  { %v1102_v32 = vsel %vm1349_vm12, 0, %v1348_v62  ;;  %v1199_v33 = vand.u32 65535, %v1195_v16  ;;  %v1200_v7 = vshrl.u32 %v1195_v16, 16  ;;  %v1227_v39 = vshll.u32 %v1224_v49, 16 }
 0x186   :  { %v987_v45 = vsel %vm985_vm4, %v972_v2, %v986_v12  ;;  %v1103_v44 = vsub.s32 32, %v1102_v32  ;;  %v1104_v42 = vshll.u32 %v1095_v29, %v1102_v32  ;;  %v1107_v18 = vsub.s32 4294967266, %v1102_v32 }
 0x187   :  { %v991_v57 = vsel %vm984_vm5, %v987_v45, %v990_v37  ;;  %v1202_v51 = vmul.u32 %v1200_v7, %v1197_v15  ;;  %v1203_v29 = vmul.u32 %v1199_v33, %v1198_v11  ;;  %v1201_v53 = vmul.u32 %v1199_v33, %v1197_v15 }
 0x188   :  { %v992_v54 = vsel %vm981_vm7, nan, %v991_v57  ;;  %v1105_v21 = vshrl.u32 %v1087_v14, %v1103_v44  ;;  %v1108_v34 = vadd.s32 127, %v1107_v18  ;;  %v1204_v36 = vmul.u32 %v1200_v7, %v1198_v11 }
 0x189   :  { %1308 = vst [vmem:[#allocation2 + $0x28] sm:$0xff] %v992_v54  ;;  %v1205_v3 = vshll.u32 %v1202_v51, 16  ;;  %v1207_v58 = vshll.u32 %v1203_v29, 16  ;;  %v1226_v22 = vmul.u32 %v1222_v63, %v1198_v11  ;;  %vm1231_vm0 = vc.u32 %v1223_v61, %v1227_v39 }
 0x18a   :  { %v1106_v43 = vor.u32 %v1105_v21, %v1104_v42  ;;  %v1109_v4 = vshll.u32 %v1108_v34, 23  ;;  %v1229_v8 = vshll.u32 %v1225_v10, 16  ;;  %v1232_v6 = vsel %vm1231_vm0, 1, %v1390_v1 }
 0x18b   :  { %vm1209_vm14 = vc.u32 %v1201_v53, %v1205_v3  ;;  %v1211_v31 = vadd.s32 %v1205_v3, %v1201_v53  ;;  %v1233_v14 = vadd.s32 %v1227_v39, %v1223_v61  ;;  %v1234_v38 = vadd.s32 %v1232_v6, %v1226_v22 }
 0x18c   :  { %v1110_v59 = vor.u32 4788187, %v1109_v4  ;;  %v1113_v50 = vcvt.s32.f32 %v1106_v43  ;;  %v1210_v48 = vsel %vm1209_vm14, 1, %v1390_v1  ;;  %v1164_v24 = vshrl.u32 %v1391_v56, %v2170_v20 }
 0x18d   :  { %v1212_v26 = vadd.s32 %v1210_v48, %v1204_v36  ;;  %vm1213_vm15 = vc.u32 %v1211_v31, %v1207_v58  ;;  %v1185_v15 = vsel %vm1183_vm10, %v2204_v47, 2102212464  ;;  %vm1235_vm1 = vc.u32 %v1233_v14, %v1229_v8 }
 0x18e   :  { %v1111_v2 = vand.u32 2147483647, %v1110_v59  ;;  %v1214_v62 = vsel %vm1213_vm15, 1, %v1390_v1  ;;  %v1206_v12 = vshrl.u32 %v1202_v51, 16  ;;  %v1236_v25 = vsel %vm1235_vm1, 1, %v1390_v1 }
 0x18f   :  { %v1216_v37 = vadd.s32 %v1214_v62, %v1212_v26  ;;  %v1184_v28 = vsel %vm1180_vm8, %v1164_v24, %v2196_v17  ;;  %v1228_v55 = vshrl.u32 %v1224_v49, 16  ;;  %v1238_v56 = vadd.s32 %v1236_v25, %v1234_v38 }
 0x190   :  { %v1114_v13 = vmul.f32 %v1113_v50, %v1111_v2  ;;  %v1186_v47 = vsel %vm1182_vm11, %v2198_v52, %v1185_v15  ;;  %v1208_v23 = vshrl.u32 %v1203_v29, 16  ;;  %v1117_v32 = vsub.s32 4, %v2172_v60 }
 0x191   :  { %v1217_v45 = vadd.s32 %v1216_v37, %v1206_v12  ;;  %v1230_v27 = vshrl.u32 %v1225_v10, 16  ;;  %v1239_v9 = vadd.s32 %v1238_v56, %v1228_v55  ;;  %v1237_v44 = vadd.s32 %v1233_v14, %v1229_v8 }
 0x192   :  { %v1115_v5 = vxor.u32 2147483648, %v1114_v13  ;;  %v1187_v42 = vsel %vm1181_vm9, %v1184_v28, %v1186_v47  ;;  %v1118_v52 = vsel %vm995_vm2, %v1117_v32, %v2172_v60  ;;  %vm1136_vm8 = vweird.f32 %v1453_v40 }
 0x193   :  { %v1218_v57 = vadd.s32 %v1217_v45, %v1208_v23  ;;  %v1240_v18 = vadd.s32 %v1239_v9, %v1230_v27  ;;  %v1241_v34 = vmul.u32 %v2175_v30, %v1187_v42  ;;  %v1120_v7 = vsel %vm2243_vm13, 0, %v1118_v52 }
 0x194   :  { %v1116_v20 = vsel %vm995_vm2, %v1115_v5, %v1114_v13  ;;  %v1137_v29 = vadd.s32 3, %v1120_v7  ;;  %vm1150_vm10 = vcmp.lt.s32.totalorder %v1455_v41, 0  ;;  %vm1149_vm11 = vcmp.le.f32.partialorder %v1148_v46, 0.7853982 }
 0x195   :  { %v1119_v1 = vsel %vm2243_vm13, %v1453_v40, %v1116_v20  ;;  %vm1243_vm3 = vc.u32 %v1218_v57, %v1237_v44  ;;  %v1244_v0 = vadd.s32 1, %v1240_v18  ;;  %v1242_v26 = vadd.s32 %v1237_v44, %v1218_v57 }
 0x196   :  { %v1121_v17 = vmul.f32 %v1119_v1, %v1119_v1  ;;  %v1138_v61 = vand.u32 3, %v1137_v29  ;;  %vm1291_vm0 = vweird.f32 %v1455_v41 }
 0x197   :  { %v1245_v33 = vsel %vm1243_vm3, %v1244_v0, %v1240_v18 }
 0x198   :  { %v1122_v54 = vmul.f32 -0.001358992, %v1121_v17  ;;  %v1129_v16 = vmul.f32 -0.00019511016, %v1121_v17  ;;  %v1246_v49 = vadd.s32 %v1245_v33, %v1241_v34  ;;  %vm1140_vm5 = vcmp.eq.s32.totalorder %v1138_v61, 0 }
 0x199   :  { %vm1143_vm6 = vcmp.eq.s32.totalorder %v1138_v61, 2  ;;  %vm1139_vm7 = vcmp.lt.s32.totalorder %v1138_v61, 2 }
 0x19a   :  { %v1123_v63 = vadd.f32 0.041655596, %v1122_v54  ;;  %v1130_v21 = vadd.f32 0.008332121, %v1129_v16  ;;  %v1247_v51 = vadd.s32 536870912, %v1246_v49 }
 0x19c   :  { %v1124_v11 = vmul.f32 %v1123_v63, %v1121_v17  ;;  %v1131_v19 = vmul.f32 %v1130_v21, %v1121_v17  ;;  %v1248_v59 = vshrl.u32 %v1247_v51, 30 }
 0x19e   :  { %v1125_v43 = vadd.f32 -0.4999988, %v1124_v11  ;;  %v1132_v4 = vadd.f32 -0.16666654, %v1131_v19  ;;  %v1249_v3 = vshll.u32 %v1248_v59, 30  ;;  %v1272_v47 = vsub.s32 4, %v1248_v59 }
 0x1a0   :  { %v1126_v10 = vmul.f32 %v1125_v43, %v1121_v17  ;;  %v1133_v39 = vmul.f32 %v1132_v4, %v1121_v17  ;;  %v1250_v36 = vsub.s32 %v1246_v49, %v1249_v3  ;;  %v1273_v27 = vsel %vm1150_vm10, %v1272_v47, %v1248_v59 }
 0x1a1   :  { %v1275_v57 = vsel %vm1149_vm11, 0, %v1273_v27 }
 0x1a2   :  { %v1127_v60 = vadd.f32 1.0, %v1126_v10  ;;  %v1134_v53 = vadd.f32 1.0, %v1133_v39  ;;  %vm1251_vm4 = vcmp.lt.s32.totalorder %v1250_v36, 0  ;;  %v1252_v35 = vsub.s32 0, %v1250_v36 }
 0x1a3   :  { %v1292_v16 = vadd.s32 3, %v1275_v57 }
 0x1a4   :  { %v1135_v50 = vmul.f32 %v1134_v53, %v1119_v1  ;;  %v1144_v30 = vxor.u32 2147483648, %v1127_v60  ;;  %v1253_v31 = vsel %vm1251_vm4, %v1252_v35, %v1250_v36 }
 0x1a5   :  { %v1254_v8 = vclz %v1253_v31  ;;  %v1293_v21 = vand.u32 3, %v1292_v16 }
 0x1a6   :  { %v1141_v58 = vxor.u32 2147483648, %v1135_v50  ;;  %v1145_v2 = vsel %vm1143_vm6, %v1144_v30, %v1135_v50 }
 0x1a7   :  { %v1351_v14 = vadd.s32 4294967294, %v1254_v8  ;;  %vm1295_vm12 = vcmp.eq.s32.totalorder %v1293_v21, 0  ;;  %vm1298_vm13 = vcmp.eq.s32.totalorder %v1293_v21, 2  ;;  %vm1294_vm14 = vcmp.lt.s32.totalorder %v1293_v21, 2 }
 0x1a8   :  { %v1142_v22 = vsel %vm1140_vm5, %v1127_v60, %v1141_v58 }
 0x1a9   :  { %v1146_v48 = vsel %vm1139_vm7, %v1142_v22, %v1145_v2  ;;  %vm1352_vm9 = vcmp.lt.s32.totalorder %v1351_v14, 0 }
 0x1aa   :  { %v1147_v6 = vsel %vm1136_vm8, nan, %v1146_v48  ;;  %v1257_v13 = vsel %vm1352_vm9, 0, %v1351_v14 }
 0x1ab   :  { %1309 = vst [vmem:[#allocation2 + $0x30] sm:$0xff] %v1147_v6  ;;  %v1258_v38 = vsub.s32 32, %v1257_v13  ;;  %v1262_v24 = vsub.s32 4294967266, %v1257_v13  ;;  %v1259_v15 = vshll.u32 %v1250_v36, %v1257_v13 }
 0x1ad   :  { %v1260_v62 = vshrl.u32 %v1242_v26, %v1258_v38  ;;  %v1263_v5 = vadd.s32 127, %v1262_v24 }
 0x1af   :  { %v1261_v12 = vor.u32 %v1260_v62, %v1259_v15  ;;  %v1264_v37 = vshll.u32 %v1263_v5, 23 }
 0x1b1   :  { %v1265_v25 = vor.u32 4788187, %v1264_v37  ;;  %v1268_v55 = vcvt.s32.f32 %v1261_v12 }
 0x1b3   :  { %v1266_v28 = vand.u32 2147483647, %v1265_v25 }
 0x1b5   :  { %v1269_v56 = vmul.f32 %v1268_v55, %v1266_v28 }
 0x1b7   :  { %v1270_v40 = vxor.u32 2147483648, %v1269_v56 }
 0x1b9   :  { %v1271_v20 = vsel %vm1150_vm10, %v1270_v40, %v1269_v56 }
 0x1ba   :  { %v1274_v23 = vsel %vm1149_vm11, %v1455_v41, %v1271_v20 }
 0x1bb   :  { %v1276_v45 = vmul.f32 %v1274_v23, %v1274_v23 }
 0x1bd   :  { %v1277_v32 = vmul.f32 -0.001358992, %v1276_v45  ;;  %v1284_v1 = vmul.f32 -0.00019511016, %v1276_v45 }
 0x1bf   :  { %v1278_v9 = vadd.f32 0.041655596, %v1277_v32  ;;  %v1285_v17 = vadd.f32 0.008332121, %v1284_v1 }
 0x1c1   :  { %v1279_v44 = vmul.f32 %v1278_v9, %v1276_v45  ;;  %v1286_v42 = vmul.f32 %v1285_v17, %v1276_v45 }
 0x1c3   :  { %v1280_v18 = vadd.f32 -0.4999988, %v1279_v44  ;;  %v1287_v54 = vadd.f32 -0.16666654, %v1286_v42 }
 0x1c5   :  { %v1281_v52 = vmul.f32 %v1280_v18, %v1276_v45  ;;  %v1288_v0 = vmul.f32 %v1287_v54, %v1276_v45 }
 0x1c7   :  { %v1282_v63 = vadd.f32 1.0, %v1281_v52  ;;  %v1289_v46 = vadd.f32 1.0, %v1288_v0 }
 0x1c9   :  { %v1290_v34 = vmul.f32 %v1289_v46, %v1274_v23  ;;  %v1299_v33 = vxor.u32 2147483648, %v1282_v63 }
 0x1cb   :  { %v1296_v7 = vxor.u32 2147483648, %v1290_v34  ;;  %v1300_v19 = vsel %vm1298_vm13, %v1299_v33, %v1290_v34 }
 0x1cd   :  { %v1297_v11 = vsel %vm1295_vm12, %v1282_v63, %v1296_v7 }
 0x1ce   :  { %v1301_v49 = vsel %vm1294_vm14, %v1297_v11, %v1300_v19 }
 0x1cf   :  { %v1302_v43 = vsel %vm1291_vm0, nan, %v1301_v49 }
 0x1d0   :  { %1310 = vst [vmem:[#allocation2 + $0x38] sm:$0xff] %v1302_v43 }
 0x1d1   :  { %1323 = dma.vmem_to_hbm [thread:$0]  %s1316_s1, 1024, %s1318_s21, [#allocation3], %s1398_s22, %s1398_s22, %s1399_s23  }
 0x1d2   :  { %1388 = dma.done.wait [#allocation3], 1024  }
 0x1d3   :  { %1389 = vsyncadd [#allocation3], 4294966272 }
 0x1d4   :  { %1328 = vsyncpa [#allocation3], 1 }

</bundles_post_ra>
